<compile_context>
chip_gen: v6e
topology: v6e:2x2x1
jax: 0.10.0
libtpu: 0.0.40
codegen_flags: <defaults>
</compile_context>

<pallas_src>
import math

import jax
import jax.numpy as jnp
from jax import lax
from jax.experimental import pallas as pl
from jax.experimental.pallas import tpu as pltpu


def _sigmoid(z):
    # Explicit form (exp + divide) so kernel and reference use identical math.
    return 1.0 / (1.0 + jnp.exp(-z))


def _make_lstm_stack_kernel(num_layers, seq_len, batch, hidden):
    """Build the fused multi-layer LSTM kernel (shapes baked in statically)."""
    L, T, B, H = num_layers, seq_len, batch, hidden

    def kernel(*args):
        # args: x_ref, [w_ih_0, w_hh_0, b_0, w_ih_1, ...], y_ref, h_ref, c_ref, act_ref
        x_ref = args[0]
        w_refs = args[1:1 + 3 * L]
        y_ref, h_ref, c_ref, act_ref = args[1 + 3 * L:]

        for layer in range(L):
            w_ih = w_refs[3 * layer][...]          # (I_l, 4H) resident in VMEM
            w_hh = w_refs[3 * layer + 1][...]      # (H,  4H)
            b = w_refs[3 * layer + 2][...]         # (1,  4H) = b_ih + b_hh

            in_ref = x_ref if layer == 0 else act_ref
            out_ref = y_ref if layer == L - 1 else act_ref

            # Input contribution for ALL timesteps in one lane-dense MXU matmul.
            # (T*B, I_l) @ (I_l, 4H) -> (T*B, 4H); bias folded in here.
            xg = jnp.dot(in_ref[...].astype(jnp.float32), w_ih,
                         preferred_element_type=jnp.float32) + b

            h = jnp.zeros((B, H), jnp.float32)
            c = jnp.zeros((B, H), jnp.float32)
            for t in range(T):  # static unroll: only static slices/stores below
                gates = xg[t * B:(t + 1) * B, :] + jnp.dot(
                    h, w_hh, preferred_element_type=jnp.float32)   # (B, 4H)
                i_g = _sigmoid(gates[:, 0 * H:1 * H])
                f_g = _sigmoid(gates[:, 1 * H:2 * H])
                g_g = jnp.tanh(gates[:, 2 * H:3 * H])
                o_g = _sigmoid(gates[:, 3 * H:4 * H])
                c = f_g * c + i_g * g_g
                h = o_g * jnp.tanh(c)
                out_ref[t * B:(t + 1) * B, :] = h.astype(out_ref.dtype)

            h_ref[layer] = h.astype(h_ref.dtype)
            c_ref[layer] = c.astype(c_ref.dtype)

    return kernel


def lrcn_forward(x, params):
    """LRCN.forward: multi-layer LSTM. Returns (lstm_out, (h_n, c_n)).

    x: (T, B, I) (PyTorch default batch_first=False), zero initial state.
    """
    T, B, I = x.shape
    H = params[0]["w_hh"].shape[0]
    L = len(params)
    G = 4 * H

    kernel = _make_lstm_stack_kernel(L, T, B, H)

    # Flatten inputs: x (as a 2-D (T*B, I) slab) followed by per-layer weights.
    in_specs = [pl.BlockSpec((T * B, I), lambda i: (0, 0))]
    flat_inputs = [x.reshape(T * B, I)]
    for p in params:
        I_l = p["w_ih"].shape[0]
        in_specs += [
            pl.BlockSpec((I_l, G), lambda i: (0, 0)),   # W_ih (VMEM resident)
            pl.BlockSpec((H, G), lambda i: (0, 0)),     # W_hh (VMEM resident)
            pl.BlockSpec((1, G), lambda i: (0, 0)),     # bias (VMEM resident)
        ]
        flat_inputs += [p["w_ih"], p["w_hh"], p["b"]]

    y2, h_n, c_n = pl.pallas_call(
        kernel,
        out_shape=(
            jax.ShapeDtypeStruct((T * B, H), x.dtype),   # lstm_out (flattened)
            jax.ShapeDtypeStruct((L, B, H), x.dtype),    # h_n
            jax.ShapeDtypeStruct((L, B, H), x.dtype),    # c_n
        ),
        grid_spec=pltpu.PrefetchScalarGridSpec(
            num_scalar_prefetch=0,
            grid=(1,),
            in_specs=in_specs,
            out_specs=(
                pl.BlockSpec((T * B, H), lambda i: (0, 0)),
                pl.BlockSpec((L, B, H), lambda i: (0, 0, 0)),
                pl.BlockSpec((L, B, H), lambda i: (0, 0, 0)),
            ),
            scratch_shapes=[
                # Inter-layer activation buffer (kept in fp32 in VMEM).
                pltpu.VMEM((T * B, H), jnp.float32),
            ],
        ),
        compiler_params=pltpu.CompilerParams(
            dimension_semantics=("arbitrary",),
        ),
    )(*flat_inputs)

    return y2.reshape(T, B, H), (h_n, c_n)


def init_lstm_params(key, input_size, num_hiddens, num_layers,
                     dtype=jnp.float32):
    """PyTorch-style uniform(-1/sqrt(H), 1/sqrt(H)) init; gate order [i,f,g,o]."""
    bound = 1.0 / math.sqrt(num_hiddens)
    params = []
    for layer in range(num_layers):
        in_dim = input_size if layer == 0 else num_hiddens
        key, k1, k2, k3, k4 = jax.random.split(key, 5)
        w_ih = jax.random.uniform(k1, (4 * num_hiddens, in_dim), dtype,
                                  -bound, bound)
        w_hh = jax.random.uniform(k2, (4 * num_hiddens, num_hiddens), dtype,
                                  -bound, bound)
        b_ih = jax.random.uniform(k3, (4 * num_hiddens,), dtype, -bound, bound)
        b_hh = jax.random.uniform(k4, (4 * num_hiddens,), dtype, -bound, bound)
        params.append(dict(
            w_ih=jnp.transpose(w_ih),                        # (I, 4H)
            w_hh=jnp.transpose(w_hh),                        # (H, 4H)
            b=(b_ih + b_hh).reshape(1, 4 * num_hiddens),     # (1, 4H)
        ))
    return params


def lstm_reference(x, params):
    """Pure-JAX reference (same math/gate order as PyTorch nn.LSTM)."""
    h_all, c_all = [], []
    layer_in = x
    for p in params:
        w_ih, w_hh, b = p["w_ih"], p["w_hh"], p["b"]
        H = w_hh.shape[0]
        B = x.shape[1]

        def step(carry, x_t, w_ih=w_ih, w_hh=w_hh, b=b, H=H):
            h, c = carry
            gates = x_t @ w_ih + h @ w_hh + b[0]
            i = _sigmoid(gates[:, 0 * H:1 * H])
            f = _sigmoid(gates[:, 1 * H:2 * H])
            g = jnp.tanh(gates[:, 2 * H:3 * H])
            o = _sigmoid(gates[:, 3 * H:4 * H])
            c = f * c + i * g
            h = o * jnp.tanh(c)
            return (h, c), h

        init = (jnp.zeros((B, H), x.dtype), jnp.zeros((B, H), x.dtype))
        (h_n, c_n), ys = lax.scan(step, init, layer_in)
        h_all.append(h_n)
        c_all.append(c_n)
        layer_in = ys
    return layer_in, (jnp.stack(h_all, axis=0), jnp.stack(c_all, axis=0))


if __name__ == "__main__":
    key = jax.random.PRNGKey(0)
    seq_len, batch = 8, 2
    input_size, num_hiddens, num_layers = 32, 32, 2

    key, xk, pk = jax.random.split(key, 3)
    x = jax.random.normal(xk, (seq_len, batch, input_size), dtype=jnp.float32)
    params = init_lstm_params(pk, input_size, num_hiddens, num_layers)

    lstm_out, (h_n, c_n) = jax.jit(lrcn_forward)(x, params)
    lstm_out = jax.block_until_ready(lstm_out)

    ref_out, (ref_h, ref_c) = lstm_reference(x, params)

    assert lstm_out.shape == (seq_len, batch, num_hiddens)
    assert h_n.shape == (num_layers, batch, num_hiddens)
    assert c_n.shape == (num_layers, batch, num_hiddens)
    assert bool(jnp.allclose(lstm_out, ref_out, atol=2e-2, rtol=2e-2))
    assert bool(jnp.allclose(h_n, ref_h, atol=2e-2, rtol=2e-2))
    assert bool(jnp.allclose(c_n, ref_c, atol=2e-2, rtol=2e-2))
    print("KERNEL_OK")
</pallas_src>

<mosaic_0001>
module attributes {stable_mosaic.version = 11 : i64} {
  func.func @kernel(%arg0: i32, %arg1: memref<16x32xf32, #tpu.memory_space<vmem>>, %arg2: memref<32x128xf32, #tpu.memory_space<vmem>>, %arg3: memref<32x128xf32, #tpu.memory_space<vmem>>, %arg4: memref<1x128xf32, #tpu.memory_space<vmem>>, %arg5: memref<32x128xf32, #tpu.memory_space<vmem>>, %arg6: memref<32x128xf32, #tpu.memory_space<vmem>>, %arg7: memref<1x128xf32, #tpu.memory_space<vmem>>, %arg8: memref<16x32xf32, #tpu.memory_space<vmem>>, %arg9: memref<2x2x32xf32, #tpu.memory_space<vmem>>, %arg10: memref<2x2x32xf32, #tpu.memory_space<vmem>>, %arg11: memref<16x32xf32, #tpu.memory_space<vmem>>) attributes {dimension_semantics = [#tpu.dimension_semantics<arbitrary>], iteration_bounds = array<i64: 1>, scalar_prefetch = 0 : i64, scratch_operands = 1 : i64, tpu.core_type = #tpu.core_type<tc>, window_params = [{pipeline_mode = #tpu.pipeline_mode<synchronous>, transform_indices = @transform_0, window_bounds = array<i64: 16, 32>}, {pipeline_mode = #tpu.pipeline_mode<synchronous>, transform_indices = @transform_1, window_bounds = array<i64: 32, 128>}, {pipeline_mode = #tpu.pipeline_mode<synchronous>, transform_indices = @transform_2, window_bounds = array<i64: 32, 128>}, {pipeline_mode = #tpu.pipeline_mode<synchronous>, transform_indices = @transform_3, window_bounds = array<i64: 1, 128>}, {pipeline_mode = #tpu.pipeline_mode<synchronous>, transform_indices = @transform_4, window_bounds = array<i64: 32, 128>}, {pipeline_mode = #tpu.pipeline_mode<synchronous>, transform_indices = @transform_5, window_bounds = array<i64: 32, 128>}, {pipeline_mode = #tpu.pipeline_mode<synchronous>, transform_indices = @transform_6, window_bounds = array<i64: 1, 128>}, {pipeline_mode = #tpu.pipeline_mode<synchronous>, transform_indices = @transform_7, window_bounds = array<i64: 16, 32>}, {pipeline_mode = #tpu.pipeline_mode<synchronous>, transform_indices = @transform_8, window_bounds = array<i64: 2, 2, 32>}, {pipeline_mode = #tpu.pipeline_mode<synchronous>, transform_indices = @transform_9, window_bounds = array<i64: 2, 2, 32>}]} {
    %c0 = arith.constant 0 : index
    %c0_0 = arith.constant 0 : index
    %0 = vector.load %arg2[%c0, %c0_0] : memref<32x128xf32, #tpu.memory_space<vmem>>, vector<32x128xf32>
    %c0_1 = arith.constant 0 : index
    %c0_2 = arith.constant 0 : index
    %1 = vector.load %arg3[%c0_1, %c0_2] : memref<32x128xf32, #tpu.memory_space<vmem>>, vector<32x128xf32>
    %c0_3 = arith.constant 0 : index
    %c0_4 = arith.constant 0 : index
    %2 = vector.load %arg4[%c0_3, %c0_4] : memref<1x128xf32, #tpu.memory_space<vmem>>, vector<1x128xf32>
    %c0_5 = arith.constant 0 : index
    %c0_6 = arith.constant 0 : index
    %3 = vector.load %arg1[%c0_5, %c0_6] : memref<16x32xf32, #tpu.memory_space<vmem>>, vector<16x32xf32>
    %cst = arith.constant dense<0.000000e+00> : vector<16x128xf32>
    %4 = tpu.matmul %3, %0, %cst {dimension_numbers = #tpu.dot_dimension_numbers<[1], [0], [0], [1], [0, 0, 1, 1], [], []>} : vector<16x32xf32>, vector<32x128xf32>, vector<16x128xf32> -> vector<16x128xf32>
    %5 = vector.broadcast %2 : vector<1x128xf32> to vector<16x128xf32>
    %6 = arith.addf %4, %5 : vector<16x128xf32>
    %cst_7 = arith.constant 0.000000e+00 : f32
    %7 = vector.broadcast %cst_7 : f32 to vector<2x32xf32>
    %cst_8 = arith.constant 0.000000e+00 : f32
    %8 = vector.broadcast %cst_8 : f32 to vector<2x32xf32>
    %9 = vector.extract_strided_slice %6 {offsets = [0, 0], sizes = [2, 128], strides = [1, 1]} : vector<16x128xf32> to vector<2x128xf32>
    %cst_9 = arith.constant dense<0.000000e+00> : vector<2x128xf32>
    %10 = tpu.matmul %7, %1, %cst_9 {dimension_numbers = #tpu.dot_dimension_numbers<[1], [0], [0], [1], [0, 0, 1, 1], [], []>} : vector<2x32xf32>, vector<32x128xf32>, vector<2x128xf32> -> vector<2x128xf32>
    %11 = arith.addf %9, %10 : vector<2x128xf32>
    %12 = vector.extract_strided_slice %11 {offsets = [0, 0], sizes = [2, 32], strides = [1, 1]} : vector<2x128xf32> to vector<2x32xf32>
    %cst_10 = arith.constant 0.000000e+00 : f32
    %13 = vector.broadcast %cst_10 : f32 to vector<2x32xf32>
    %14 = arith.subf %13, %12 : vector<2x32xf32>
    %15 = math.exp %14 : vector<2x32xf32>
    %cst_11 = arith.constant 1.000000e+00 : f32
    %16 = vector.broadcast %cst_11 : f32 to vector<2x32xf32>
    %17 = arith.addf %16, %15 : vector<2x32xf32>
    %cst_12 = arith.constant 1.000000e+00 : f32
    %18 = vector.broadcast %cst_12 : f32 to vector<2x32xf32>
    %19 = arith.divf %18, %17 : vector<2x32xf32>
    %20 = vector.extract_strided_slice %11 {offsets = [0, 32], sizes = [2, 32], strides = [1, 1]} : vector<2x128xf32> to vector<2x32xf32>
    %cst_13 = arith.constant 0.000000e+00 : f32
    %21 = vector.broadcast %cst_13 : f32 to vector<2x32xf32>
    %22 = arith.subf %21, %20 : vector<2x32xf32>
    %23 = math.exp %22 : vector<2x32xf32>
    %cst_14 = arith.constant 1.000000e+00 : f32
    %24 = vector.broadcast %cst_14 : f32 to vector<2x32xf32>
    %25 = arith.addf %24, %23 : vector<2x32xf32>
    %cst_15 = arith.constant 1.000000e+00 : f32
    %26 = vector.broadcast %cst_15 : f32 to vector<2x32xf32>
    %27 = arith.divf %26, %25 : vector<2x32xf32>
    %28 = vector.extract_strided_slice %11 {offsets = [0, 64], sizes = [2, 32], strides = [1, 1]} : vector<2x128xf32> to vector<2x32xf32>
    %29 = math.tanh %28 : vector<2x32xf32>
    %30 = vector.extract_strided_slice %11 {offsets = [0, 96], sizes = [2, 32], strides = [1, 1]} : vector<2x128xf32> to vector<2x32xf32>
    %cst_16 = arith.constant 0.000000e+00 : f32
    %31 = vector.broadcast %cst_16 : f32 to vector<2x32xf32>
    %32 = arith.subf %31, %30 : vector<2x32xf32>
    %33 = math.exp %32 : vector<2x32xf32>
    %cst_17 = arith.constant 1.000000e+00 : f32
    %34 = vector.broadcast %cst_17 : f32 to vector<2x32xf32>
    %35 = arith.addf %34, %33 : vector<2x32xf32>
    %cst_18 = arith.constant 1.000000e+00 : f32
    %36 = vector.broadcast %cst_18 : f32 to vector<2x32xf32>
    %37 = arith.divf %36, %35 : vector<2x32xf32>
    %38 = arith.mulf %27, %8 : vector<2x32xf32>
    %39 = arith.mulf %19, %29 : vector<2x32xf32>
    %40 = arith.addf %38, %39 : vector<2x32xf32>
    %41 = math.tanh %40 : vector<2x32xf32>
    %42 = arith.mulf %37, %41 : vector<2x32xf32>
    %c0_19 = arith.constant 0 : index
    %c0_20 = arith.constant 0 : index
    %43 = vector.load %arg11[%c0_19, %c0_20] : memref<16x32xf32, #tpu.memory_space<vmem>>, vector<2x32xf32>
    tpu.vector_store %arg11[%c0_19, %c0_20], %42 {strides = array<i32>} : memref<16x32xf32, #tpu.memory_space<vmem>>, vector<2x32xf32>,
    %44 = vector.extract_strided_slice %6 {offsets = [2, 0], sizes = [2, 128], strides = [1, 1]} : vector<16x128xf32> to vector<2x128xf32>
    %cst_21 = arith.constant dense<0.000000e+00> : vector<2x128xf32>
    %45 = tpu.matmul %42, %1, %cst_21 {dimension_numbers = #tpu.dot_dimension_numbers<[1], [0], [0], [1], [0, 0, 1, 1], [], []>} : vector<2x32xf32>, vector<32x128xf32>, vector<2x128xf32> -> vector<2x128xf32>
    %46 = arith.addf %44, %45 : vector<2x128xf32>
    %47 = vector.extract_strided_slice %46 {offsets = [0, 0], sizes = [2, 32], strides = [1, 1]} : vector<2x128xf32> to vector<2x32xf32>
    %cst_22 = arith.constant 0.000000e+00 : f32
    %48 = vector.broadcast %cst_22 : f32 to vector<2x32xf32>
    %49 = arith.subf %48, %47 : vector<2x32xf32>
    %50 = math.exp %49 : vector<2x32xf32>
    %cst_23 = arith.constant 1.000000e+00 : f32
    %51 = vector.broadcast %cst_23 : f32 to vector<2x32xf32>
    %52 = arith.addf %51, %50 : vector<2x32xf32>
    %cst_24 = arith.constant 1.000000e+00 : f32
    %53 = vector.broadcast %cst_24 : f32 to vector<2x32xf32>
    %54 = arith.divf %53, %52 : vector<2x32xf32>
    %55 = vector.extract_strided_slice %46 {offsets = [0, 32], sizes = [2, 32], strides = [1, 1]} : vector<2x128xf32> to vector<2x32xf32>
    %cst_25 = arith.constant 0.000000e+00 : f32
    %56 = vector.broadcast %cst_25 : f32 to vector<2x32xf32>
    %57 = arith.subf %56, %55 : vector<2x32xf32>
    %58 = math.exp %57 : vector<2x32xf32>
    %cst_26 = arith.constant 1.000000e+00 : f32
    %59 = vector.broadcast %cst_26 : f32 to vector<2x32xf32>
    %60 = arith.addf %59, %58 : vector<2x32xf32>
    %cst_27 = arith.constant 1.000000e+00 : f32
    %61 = vector.broadcast %cst_27 : f32 to vector<2x32xf32>
    %62 = arith.divf %61, %60 : vector<2x32xf32>
    %63 = vector.extract_strided_slice %46 {offsets = [0, 64], sizes = [2, 32], strides = [1, 1]} : vector<2x128xf32> to vector<2x32xf32>
    %64 = math.tanh %63 : vector<2x32xf32>
    %65 = vector.extract_strided_slice %46 {offsets = [0, 96], sizes = [2, 32], strides = [1, 1]} : vector<2x128xf32> to vector<2x32xf32>
    %cst_28 = arith.constant 0.000000e+00 : f32
    %66 = vector.broadcast %cst_28 : f32 to vector<2x32xf32>
    %67 = arith.subf %66, %65 : vector<2x32xf32>
    %68 = math.exp %67 : vector<2x32xf32>
    %cst_29 = arith.constant 1.000000e+00 : f32
    %69 = vector.broadcast %cst_29 : f32 to vector<2x32xf32>
    %70 = arith.addf %69, %68 : vector<2x32xf32>
    %cst_30 = arith.constant 1.000000e+00 : f32
    %71 = vector.broadcast %cst_30 : f32 to vector<2x32xf32>
    %72 = arith.divf %71, %70 : vector<2x32xf32>
    %73 = arith.mulf %62, %40 : vector<2x32xf32>
    %74 = arith.mulf %54, %64 : vector<2x32xf32>
    %75 = arith.addf %73, %74 : vector<2x32xf32>
    %76 = math.tanh %75 : vector<2x32xf32>
    %77 = arith.mulf %72, %76 : vector<2x32xf32>
    %c2 = arith.constant 2 : index
    %c0_31 = arith.constant 0 : index
    %78 = vector.load %arg11[%c2, %c0_31] : memref<16x32xf32, #tpu.memory_space<vmem>>, vector<2x32xf32>
    tpu.vector_store %arg11[%c2, %c0_31], %77 {strides = array<i32>} : memref<16x32xf32, #tpu.memory_space<vmem>>, vector<2x32xf32>,
    %79 = vector.extract_strided_slice %6 {offsets = [4, 0], sizes = [2, 128], strides = [1, 1]} : vector<16x128xf32> to vector<2x128xf32>
    %cst_32 = arith.constant dense<0.000000e+00> : vector<2x128xf32>
    %80 = tpu.matmul %77, %1, %cst_32 {dimension_numbers = #tpu.dot_dimension_numbers<[1], [0], [0], [1], [0, 0, 1, 1], [], []>} : vector<2x32xf32>, vector<32x128xf32>, vector<2x128xf32> -> vector<2x128xf32>
    %81 = arith.addf %79, %80 : vector<2x128xf32>
    %82 = vector.extract_strided_slice %81 {offsets = [0, 0], sizes = [2, 32], strides = [1, 1]} : vector<2x128xf32> to vector<2x32xf32>
    %cst_33 = arith.constant 0.000000e+00 : f32
    %83 = vector.broadcast %cst_33 : f32 to vector<2x32xf32>
    %84 = arith.subf %83, %82 : vector<2x32xf32>
    %85 = math.exp %84 : vector<2x32xf32>
    %cst_34 = arith.constant 1.000000e+00 : f32
    %86 = vector.broadcast %cst_34 : f32 to vector<2x32xf32>
    %87 = arith.addf %86, %85 : vector<2x32xf32>
    %cst_35 = arith.constant 1.000000e+00 : f32
    %88 = vector.broadcast %cst_35 : f32 to vector<2x32xf32>
    %89 = arith.divf %88, %87 : vector<2x32xf32>
    %90 = vector.extract_strided_slice %81 {offsets = [0, 32], sizes = [2, 32], strides = [1, 1]} : vector<2x128xf32> to vector<2x32xf32>
    %cst_36 = arith.constant 0.000000e+00 : f32
    %91 = vector.broadcast %cst_36 : f32 to vector<2x32xf32>
    %92 = arith.subf %91, %90 : vector<2x32xf32>
    %93 = math.exp %92 : vector<2x32xf32>
    %cst_37 = arith.constant 1.000000e+00 : f32
    %94 = vector.broadcast %cst_37 : f32 to vector<2x32xf32>
    %95 = arith.addf %94, %93 : vector<2x32xf32>
    %cst_38 = arith.constant 1.000000e+00 : f32
    %96 = vector.broadcast %cst_38 : f32 to vector<2x32xf32>
    %97 = arith.divf %96, %95 : vector<2x32xf32>
    %98 = vector.extract_strided_slice %81 {offsets = [0, 64], sizes = [2, 32], strides = [1, 1]} : vector<2x128xf32> to vector<2x32xf32>
    %99 = math.tanh %98 : vector<2x32xf32>
    %100 = vector.extract_strided_slice %81 {offsets = [0, 96], sizes = [2, 32], strides = [1, 1]} : vector<2x128xf32> to vector<2x32xf32>
    %cst_39 = arith.constant 0.000000e+00 : f32
    %101 = vector.broadcast %cst_39 : f32 to vector<2x32xf32>
    %102 = arith.subf %101, %100 : vector<2x32xf32>
    %103 = math.exp %102 : vector<2x32xf32>
    %cst_40 = arith.constant 1.000000e+00 : f32
    %104 = vector.broadcast %cst_40 : f32 to vector<2x32xf32>
    %105 = arith.addf %104, %103 : vector<2x32xf32>
    %cst_41 = arith.constant 1.000000e+00 : f32
    %106 = vector.broadcast %cst_41 : f32 to vector<2x32xf32>
    %107 = arith.divf %106, %105 : vector<2x32xf32>
    %108 = arith.mulf %97, %75 : vector<2x32xf32>
    %109 = arith.mulf %89, %99 : vector<2x32xf32>
    %110 = arith.addf %108, %109 : vector<2x32xf32>
    %111 = math.tanh %110 : vector<2x32xf32>
    %112 = arith.mulf %107, %111 : vector<2x32xf32>
    %c4 = arith.constant 4 : index
    %c0_42 = arith.constant 0 : index
    %113 = vector.load %arg11[%c4, %c0_42] : memref<16x32xf32, #tpu.memory_space<vmem>>, vector<2x32xf32>
    tpu.vector_store %arg11[%c4, %c0_42], %112 {strides = array<i32>} : memref<16x32xf32, #tpu.memory_space<vmem>>, vector<2x32xf32>,
    %114 = vector.extract_strided_slice %6 {offsets = [6, 0], sizes = [2, 128], strides = [1, 1]} : vector<16x128xf32> to vector<2x128xf32>
    %cst_43 = arith.constant dense<0.000000e+00> : vector<2x128xf32>
    %115 = tpu.matmul %112, %1, %cst_43 {dimension_numbers = #tpu.dot_dimension_numbers<[1], [0], [0], [1], [0, 0, 1, 1], [], []>} : vector<2x32xf32>, vector<32x128xf32>, vector<2x128xf32> -> vector<2x128xf32>
    %116 = arith.addf %114, %115 : vector<2x128xf32>
    %117 = vector.extract_strided_slice %116 {offsets = [0, 0], sizes = [2, 32], strides = [1, 1]} : vector<2x128xf32> to vector<2x32xf32>
    %cst_44 = arith.constant 0.000000e+00 : f32
    %118 = vector.broadcast %cst_44 : f32 to vector<2x32xf32>
    %119 = arith.subf %118, %117 : vector<2x32xf32>
    %120 = math.exp %119 : vector<2x32xf32>
    %cst_45 = arith.constant 1.000000e+00 : f32
    %121 = vector.broadcast %cst_45 : f32 to vector<2x32xf32>
    %122 = arith.addf %121, %120 : vector<2x32xf32>
    %cst_46 = arith.constant 1.000000e+00 : f32
    %123 = vector.broadcast %cst_46 : f32 to vector<2x32xf32>
    %124 = arith.divf %123, %122 : vector<2x32xf32>
    %125 = vector.extract_strided_slice %116 {offsets = [0, 32], sizes = [2, 32], strides = [1, 1]} : vector<2x128xf32> to vector<2x32xf32>
    %cst_47 = arith.constant 0.000000e+00 : f32
    %126 = vector.broadcast %cst_47 : f32 to vector<2x32xf32>
    %127 = arith.subf %126, %125 : vector<2x32xf32>
    %128 = math.exp %127 : vector<2x32xf32>
    %cst_48 = arith.constant 1.000000e+00 : f32
    %129 = vector.broadcast %cst_48 : f32 to vector<2x32xf32>
    %130 = arith.addf %129, %128 : vector<2x32xf32>
    %cst_49 = arith.constant 1.000000e+00 : f32
    %131 = vector.broadcast %cst_49 : f32 to vector<2x32xf32>
    %132 = arith.divf %131, %130 : vector<2x32xf32>
    %133 = vector.extract_strided_slice %116 {offsets = [0, 64], sizes = [2, 32], strides = [1, 1]} : vector<2x128xf32> to vector<2x32xf32>
    %134 = math.tanh %133 : vector<2x32xf32>
    %135 = vector.extract_strided_slice %116 {offsets = [0, 96], sizes = [2, 32], strides = [1, 1]} : vector<2x128xf32> to vector<2x32xf32>
    %cst_50 = arith.constant 0.000000e+00 : f32
    %136 = vector.broadcast %cst_50 : f32 to vector<2x32xf32>
    %137 = arith.subf %136, %135 : vector<2x32xf32>
    %138 = math.exp %137 : vector<2x32xf32>
    %cst_51 = arith.constant 1.000000e+00 : f32
    %139 = vector.broadcast %cst_51 : f32 to vector<2x32xf32>
    %140 = arith.addf %139, %138 : vector<2x32xf32>
    %cst_52 = arith.constant 1.000000e+00 : f32
    %141 = vector.broadcast %cst_52 : f32 to vector<2x32xf32>
    %142 = arith.divf %141, %140 : vector<2x32xf32>
    %143 = arith.mulf %132, %110 : vector<2x32xf32>
    %144 = arith.mulf %124, %134 : vector<2x32xf32>
    %145 = arith.addf %143, %144 : vector<2x32xf32>
    %146 = math.tanh %145 : vector<2x32xf32>
    %147 = arith.mulf %142, %146 : vector<2x32xf32>
    %c6 = arith.constant 6 : index
    %c0_53 = arith.constant 0 : index
    %148 = vector.load %arg11[%c6, %c0_53] : memref<16x32xf32, #tpu.memory_space<vmem>>, vector<2x32xf32>
    tpu.vector_store %arg11[%c6, %c0_53], %147 {strides = array<i32>} : memref<16x32xf32, #tpu.memory_space<vmem>>, vector<2x32xf32>,
    %149 = vector.extract_strided_slice %6 {offsets = [8, 0], sizes = [2, 128], strides = [1, 1]} : vector<16x128xf32> to vector<2x128xf32>
    %cst_54 = arith.constant dense<0.000000e+00> : vector<2x128xf32>
    %150 = tpu.matmul %147, %1, %cst_54 {dimension_numbers = #tpu.dot_dimension_numbers<[1], [0], [0], [1], [0, 0, 1, 1], [], []>} : vector<2x32xf32>, vector<32x128xf32>, vector<2x128xf32> -> vector<2x128xf32>
    %151 = arith.addf %149, %150 : vector<2x128xf32>
    %152 = vector.extract_strided_slice %151 {offsets = [0, 0], sizes = [2, 32], strides = [1, 1]} : vector<2x128xf32> to vector<2x32xf32>
    %cst_55 = arith.constant 0.000000e+00 : f32
    %153 = vector.broadcast %cst_55 : f32 to vector<2x32xf32>
    %154 = arith.subf %153, %152 : vector<2x32xf32>
    %155 = math.exp %154 : vector<2x32xf32>
    %cst_56 = arith.constant 1.000000e+00 : f32
    %156 = vector.broadcast %cst_56 : f32 to vector<2x32xf32>
    %157 = arith.addf %156, %155 : vector<2x32xf32>
    %cst_57 = arith.constant 1.000000e+00 : f32
    %158 = vector.broadcast %cst_57 : f32 to vector<2x32xf32>
    %159 = arith.divf %158, %157 : vector<2x32xf32>
    %160 = vector.extract_strided_slice %151 {offsets = [0, 32], sizes = [2, 32], strides = [1, 1]} : vector<2x128xf32> to vector<2x32xf32>
    %cst_58 = arith.constant 0.000000e+00 : f32
    %161 = vector.broadcast %cst_58 : f32 to vector<2x32xf32>
    %162 = arith.subf %161, %160 : vector<2x32xf32>
    %163 = math.exp %162 : vector<2x32xf32>
    %cst_59 = arith.constant 1.000000e+00 : f32
    %164 = vector.broadcast %cst_59 : f32 to vector<2x32xf32>
    %165 = arith.addf %164, %163 : vector<2x32xf32>
    %cst_60 = arith.constant 1.000000e+00 : f32
    %166 = vector.broadcast %cst_60 : f32 to vector<2x32xf32>
    %167 = arith.divf %166, %165 : vector<2x32xf32>
    %168 = vector.extract_strided_slice %151 {offsets = [0, 64], sizes = [2, 32], strides = [1, 1]} : vector<2x128xf32> to vector<2x32xf32>
    %169 = math.tanh %168 : vector<2x32xf32>
    %170 = vector.extract_strided_slice %151 {offsets = [0, 96], sizes = [2, 32], strides = [1, 1]} : vector<2x128xf32> to vector<2x32xf32>
    %cst_61 = arith.constant 0.000000e+00 : f32
    %171 = vector.broadcast %cst_61 : f32 to vector<2x32xf32>
    %172 = arith.subf %171, %170 : vector<2x32xf32>
    %173 = math.exp %172 : vector<2x32xf32>
    %cst_62 = arith.constant 1.000000e+00 : f32
    %174 = vector.broadcast %cst_62 : f32 to vector<2x32xf32>
    %175 = arith.addf %174, %173 : vector<2x32xf32>
    %cst_63 = arith.constant 1.000000e+00 : f32
    %176 = vector.broadcast %cst_63 : f32 to vector<2x32xf32>
    %177 = arith.divf %176, %175 : vector<2x32xf32>
    %178 = arith.mulf %167, %145 : vector<2x32xf32>
    %179 = arith.mulf %159, %169 : vector<2x32xf32>
    %180 = arith.addf %178, %179 : vector<2x32xf32>
    %181 = math.tanh %180 : vector<2x32xf32>
    %182 = arith.mulf %177, %181 : vector<2x32xf32>
    %c8 = arith.constant 8 : index
    %c0_64 = arith.constant 0 : index
    %183 = vector.load %arg11[%c8, %c0_64] : memref<16x32xf32, #tpu.memory_space<vmem>>, vector<2x32xf32>
    tpu.vector_store %arg11[%c8, %c0_64], %182 {strides = array<i32>} : memref<16x32xf32, #tpu.memory_space<vmem>>, vector<2x32xf32>,
    %184 = vector.extract_strided_slice %6 {offsets = [10, 0], sizes = [2, 128], strides = [1, 1]} : vector<16x128xf32> to vector<2x128xf32>
    %cst_65 = arith.constant dense<0.000000e+00> : vector<2x128xf32>
    %185 = tpu.matmul %182, %1, %cst_65 {dimension_numbers = #tpu.dot_dimension_numbers<[1], [0], [0], [1], [0, 0, 1, 1], [], []>} : vector<2x32xf32>, vector<32x128xf32>, vector<2x128xf32> -> vector<2x128xf32>
    %186 = arith.addf %184, %185 : vector<2x128xf32>
    %187 = vector.extract_strided_slice %186 {offsets = [0, 0], sizes = [2, 32], strides = [1, 1]} : vector<2x128xf32> to vector<2x32xf32>
    %cst_66 = arith.constant 0.000000e+00 : f32
    %188 = vector.broadcast %cst_66 : f32 to vector<2x32xf32>
    %189 = arith.subf %188, %187 : vector<2x32xf32>
    %190 = math.exp %189 : vector<2x32xf32>
    %cst_67 = arith.constant 1.000000e+00 : f32
    %191 = vector.broadcast %cst_67 : f32 to vector<2x32xf32>
    %192 = arith.addf %191, %190 : vector<2x32xf32>
    %cst_68 = arith.constant 1.000000e+00 : f32
    %193 = vector.broadcast %cst_68 : f32 to vector<2x32xf32>
    %194 = arith.divf %193, %192 : vector<2x32xf32>
    %195 = vector.extract_strided_slice %186 {offsets = [0, 32], sizes = [2, 32], strides = [1, 1]} : vector<2x128xf32> to vector<2x32xf32>
    %cst_69 = arith.constant 0.000000e+00 : f32
    %196 = vector.broadcast %cst_69 : f32 to vector<2x32xf32>
    %197 = arith.subf %196, %195 : vector<2x32xf32>
    %198 = math.exp %197 : vector<2x32xf32>
    %cst_70 = arith.constant 1.000000e+00 : f32
    %199 = vector.broadcast %cst_70 : f32 to vector<2x32xf32>
    %200 = arith.addf %199, %198 : vector<2x32xf32>
    %cst_71 = arith.constant 1.000000e+00 : f32
    %201 = vector.broadcast %cst_71 : f32 to vector<2x32xf32>
    %202 = arith.divf %201, %200 : vector<2x32xf32>
    %203 = vector.extract_strided_slice %186 {offsets = [0, 64], sizes = [2, 32], strides = [1, 1]} : vector<2x128xf32> to vector<2x32xf32>
    %204 = math.tanh %203 : vector<2x32xf32>
    %205 = vector.extract_strided_slice %186 {offsets = [0, 96], sizes = [2, 32], strides = [1, 1]} : vector<2x128xf32> to vector<2x32xf32>
    %cst_72 = arith.constant 0.000000e+00 : f32
    %206 = vector.broadcast %cst_72 : f32 to vector<2x32xf32>
    %207 = arith.subf %206, %205 : vector<2x32xf32>
    %208 = math.exp %207 : vector<2x32xf32>
    %cst_73 = arith.constant 1.000000e+00 : f32
    %209 = vector.broadcast %cst_73 : f32 to vector<2x32xf32>
    %210 = arith.addf %209, %208 : vector<2x32xf32>
    %cst_74 = arith.constant 1.000000e+00 : f32
    %211 = vector.broadcast %cst_74 : f32 to vector<2x32xf32>
    %212 = arith.divf %211, %210 : vector<2x32xf32>
    %213 = arith.mulf %202, %180 : vector<2x32xf32>
    %214 = arith.mulf %194, %204 : vector<2x32xf32>
    %215 = arith.addf %213, %214 : vector<2x32xf32>
    %216 = math.tanh %215 : vector<2x32xf32>
    %217 = arith.mulf %212, %216 : vector<2x32xf32>
    %c10 = arith.constant 10 : index
    %c0_75 = arith.constant 0 : index
    %218 = vector.load %arg11[%c10, %c0_75] : memref<16x32xf32, #tpu.memory_space<vmem>>, vector<2x32xf32>
    tpu.vector_store %arg11[%c10, %c0_75], %217 {strides = array<i32>} : memref<16x32xf32, #tpu.memory_space<vmem>>, vector<2x32xf32>,
    %219 = vector.extract_strided_slice %6 {offsets = [12, 0], sizes = [2, 128], strides = [1, 1]} : vector<16x128xf32> to vector<2x128xf32>
    %cst_76 = arith.constant dense<0.000000e+00> : vector<2x128xf32>
    %220 = tpu.matmul %217, %1, %cst_76 {dimension_numbers = #tpu.dot_dimension_numbers<[1], [0], [0], [1], [0, 0, 1, 1], [], []>} : vector<2x32xf32>, vector<32x128xf32>, vector<2x128xf32> -> vector<2x128xf32>
    %221 = arith.addf %219, %220 : vector<2x128xf32>
    %222 = vector.extract_strided_slice %221 {offsets = [0, 0], sizes = [2, 32], strides = [1, 1]} : vector<2x128xf32> to vector<2x32xf32>
    %cst_77 = arith.constant 0.000000e+00 : f32
    %223 = vector.broadcast %cst_77 : f32 to vector<2x32xf32>
    %224 = arith.subf %223, %222 : vector<2x32xf32>
    %225 = math.exp %224 : vector<2x32xf32>
    %cst_78 = arith.constant 1.000000e+00 : f32
    %226 = vector.broadcast %cst_78 : f32 to vector<2x32xf32>
    %227 = arith.addf %226, %225 : vector<2x32xf32>
    %cst_79 = arith.constant 1.000000e+00 : f32
    %228 = vector.broadcast %cst_79 : f32 to vector<2x32xf32>
    %229 = arith.divf %228, %227 : vector<2x32xf32>
    %230 = vector.extract_strided_slice %221 {offsets = [0, 32], sizes = [2, 32], strides = [1, 1]} : vector<2x128xf32> to vector<2x32xf32>
    %cst_80 = arith.constant 0.000000e+00 : f32
    %231 = vector.broadcast %cst_80 : f32 to vector<2x32xf32>
    %232 = arith.subf %231, %230 : vector<2x32xf32>
    %233 = math.exp %232 : vector<2x32xf32>
    %cst_81 = arith.constant 1.000000e+00 : f32
    %234 = vector.broadcast %cst_81 : f32 to vector<2x32xf32>
    %235 = arith.addf %234, %233 : vector<2x32xf32>
    %cst_82 = arith.constant 1.000000e+00 : f32
    %236 = vector.broadcast %cst_82 : f32 to vector<2x32xf32>
    %237 = arith.divf %236, %235 : vector<2x32xf32>
    %238 = vector.extract_strided_slice %221 {offsets = [0, 64], sizes = [2, 32], strides = [1, 1]} : vector<2x128xf32> to vector<2x32xf32>
    %239 = math.tanh %238 : vector<2x32xf32>
    %240 = vector.extract_strided_slice %221 {offsets = [0, 96], sizes = [2, 32], strides = [1, 1]} : vector<2x128xf32> to vector<2x32xf32>
    %cst_83 = arith.constant 0.000000e+00 : f32
    %241 = vector.broadcast %cst_83 : f32 to vector<2x32xf32>
    %242 = arith.subf %241, %240 : vector<2x32xf32>
    %243 = math.exp %242 : vector<2x32xf32>
    %cst_84 = arith.constant 1.000000e+00 : f32
    %244 = vector.broadcast %cst_84 : f32 to vector<2x32xf32>
    %245 = arith.addf %244, %243 : vector<2x32xf32>
    %cst_85 = arith.constant 1.000000e+00 : f32
    %246 = vector.broadcast %cst_85 : f32 to vector<2x32xf32>
    %247 = arith.divf %246, %245 : vector<2x32xf32>
    %248 = arith.mulf %237, %215 : vector<2x32xf32>
    %249 = arith.mulf %229, %239 : vector<2x32xf32>
    %250 = arith.addf %248, %249 : vector<2x32xf32>
    %251 = math.tanh %250 : vector<2x32xf32>
    %252 = arith.mulf %247, %251 : vector<2x32xf32>
    %c12 = arith.constant 12 : index
    %c0_86 = arith.constant 0 : index
    %253 = vector.load %arg11[%c12, %c0_86] : memref<16x32xf32, #tpu.memory_space<vmem>>, vector<2x32xf32>
    tpu.vector_store %arg11[%c12, %c0_86], %252 {strides = array<i32>} : memref<16x32xf32, #tpu.memory_space<vmem>>, vector<2x32xf32>,
    %254 = vector.extract_strided_slice %6 {offsets = [14, 0], sizes = [2, 128], strides = [1, 1]} : vector<16x128xf32> to vector<2x128xf32>
    %cst_87 = arith.constant dense<0.000000e+00> : vector<2x128xf32>
    %255 = tpu.matmul %252, %1, %cst_87 {dimension_numbers = #tpu.dot_dimension_numbers<[1], [0], [0], [1], [0, 0, 1, 1], [], []>} : vector<2x32xf32>, vector<32x128xf32>, vector<2x128xf32> -> vector<2x128xf32>
    %256 = arith.addf %254, %255 : vector<2x128xf32>
    %257 = vector.extract_strided_slice %256 {offsets = [0, 0], sizes = [2, 32], strides = [1, 1]} : vector<2x128xf32> to vector<2x32xf32>
    %cst_88 = arith.constant 0.000000e+00 : f32
    %258 = vector.broadcast %cst_88 : f32 to vector<2x32xf32>
    %259 = arith.subf %258, %257 : vector<2x32xf32>
    %260 = math.exp %259 : vector<2x32xf32>
    %cst_89 = arith.constant 1.000000e+00 : f32
    %261 = vector.broadcast %cst_89 : f32 to vector<2x32xf32>
    %262 = arith.addf %261, %260 : vector<2x32xf32>
    %cst_90 = arith.constant 1.000000e+00 : f32
    %263 = vector.broadcast %cst_90 : f32 to vector<2x32xf32>
    %264 = arith.divf %263, %262 : vector<2x32xf32>
    %265 = vector.extract_strided_slice %256 {offsets = [0, 32], sizes = [2, 32], strides = [1, 1]} : vector<2x128xf32> to vector<2x32xf32>
    %cst_91 = arith.constant 0.000000e+00 : f32
    %266 = vector.broadcast %cst_91 : f32 to vector<2x32xf32>
    %267 = arith.subf %266, %265 : vector<2x32xf32>
    %268 = math.exp %267 : vector<2x32xf32>
    %cst_92 = arith.constant 1.000000e+00 : f32
    %269 = vector.broadcast %cst_92 : f32 to vector<2x32xf32>
    %270 = arith.addf %269, %268 : vector<2x32xf32>
    %cst_93 = arith.constant 1.000000e+00 : f32
    %271 = vector.broadcast %cst_93 : f32 to vector<2x32xf32>
    %272 = arith.divf %271, %270 : vector<2x32xf32>
    %273 = vector.extract_strided_slice %256 {offsets = [0, 64], sizes = [2, 32], strides = [1, 1]} : vector<2x128xf32> to vector<2x32xf32>
    %274 = math.tanh %273 : vector<2x32xf32>
    %275 = vector.extract_strided_slice %256 {offsets = [0, 96], sizes = [2, 32], strides = [1, 1]} : vector<2x128xf32> to vector<2x32xf32>
    %cst_94 = arith.constant 0.000000e+00 : f32
    %276 = vector.broadcast %cst_94 : f32 to vector<2x32xf32>
    %277 = arith.subf %276, %275 : vector<2x32xf32>
    %278 = math.exp %277 : vector<2x32xf32>
    %cst_95 = arith.constant 1.000000e+00 : f32
    %279 = vector.broadcast %cst_95 : f32 to vector<2x32xf32>
    %280 = arith.addf %279, %278 : vector<2x32xf32>
    %cst_96 = arith.constant 1.000000e+00 : f32
    %281 = vector.broadcast %cst_96 : f32 to vector<2x32xf32>
    %282 = arith.divf %281, %280 : vector<2x32xf32>
    %283 = arith.mulf %272, %250 : vector<2x32xf32>
    %284 = arith.mulf %264, %274 : vector<2x32xf32>
    %285 = arith.addf %283, %284 : vector<2x32xf32>
    %286 = math.tanh %285 : vector<2x32xf32>
    %287 = arith.mulf %282, %286 : vector<2x32xf32>
    %c14 = arith.constant 14 : index
    %c0_97 = arith.constant 0 : index
    %288 = vector.load %arg11[%c14, %c0_97] : memref<16x32xf32, #tpu.memory_space<vmem>>, vector<2x32xf32>
    tpu.vector_store %arg11[%c14, %c0_97], %287 {strides = array<i32>} : memref<16x32xf32, #tpu.memory_space<vmem>>, vector<2x32xf32>,
    %c0_98 = arith.constant 0 : index
    %c0_99 = arith.constant 0 : index
    %c0_100 = arith.constant 0 : index
    %289 = vector.load %arg9[%c0_98, %c0_99, %c0_100] : memref<2x2x32xf32, #tpu.memory_space<vmem>>, vector<1x2x32xf32>
    %290 = vector.shape_cast %289 : vector<1x2x32xf32> to vector<2x32xf32>
    %291 = vector.shape_cast %287 : vector<2x32xf32> to vector<1x2x32xf32>
    tpu.vector_store %arg9[%c0_98, %c0_99, %c0_100], %291 {strides = array<i32>} : memref<2x2x32xf32, #tpu.memory_space<vmem>>, vector<1x2x32xf32>,
    %c0_101 = arith.constant 0 : index
    %c0_102 = arith.constant 0 : index
    %c0_103 = arith.constant 0 : index
    %292 = vector.load %arg10[%c0_101, %c0_102, %c0_103] : memref<2x2x32xf32, #tpu.memory_space<vmem>>, vector<1x2x32xf32>
    %293 = vector.shape_cast %292 : vector<1x2x32xf32> to vector<2x32xf32>
    %294 = vector.shape_cast %285 : vector<2x32xf32> to vector<1x2x32xf32>
    tpu.vector_store %arg10[%c0_101, %c0_102, %c0_103], %294 {strides = array<i32>} : memref<2x2x32xf32, #tpu.memory_space<vmem>>, vector<1x2x32xf32>,
    %c0_104 = arith.constant 0 : index
    %c0_105 = arith.constant 0 : index
    %295 = vector.load %arg5[%c0_104, %c0_105] : memref<32x128xf32, #tpu.memory_space<vmem>>, vector<32x128xf32>
    %c0_106 = arith.constant 0 : index
    %c0_107 = arith.constant 0 : index
    %296 = vector.load %arg6[%c0_106, %c0_107] : memref<32x128xf32, #tpu.memory_space<vmem>>, vector<32x128xf32>
    %c0_108 = arith.constant 0 : index
    %c0_109 = arith.constant 0 : index
    %297 = vector.load %arg7[%c0_108, %c0_109] : memref<1x128xf32, #tpu.memory_space<vmem>>, vector<1x128xf32>
    %c0_110 = arith.constant 0 : index
    %c0_111 = arith.constant 0 : index
    %298 = vector.load %arg11[%c0_110, %c0_111] : memref<16x32xf32, #tpu.memory_space<vmem>>, vector<16x32xf32>
    %cst_112 = arith.constant dense<0.000000e+00> : vector<16x128xf32>
    %299 = tpu.matmul %298, %295, %cst_112 {dimension_numbers = #tpu.dot_dimension_numbers<[1], [0], [0], [1], [0, 0, 1, 1], [], []>} : vector<16x32xf32>, vector<32x128xf32>, vector<16x128xf32> -> vector<16x128xf32>
    %300 = vector.broadcast %297 : vector<1x128xf32> to vector<16x128xf32>
    %301 = arith.addf %299, %300 : vector<16x128xf32>
    %cst_113 = arith.constant 0.000000e+00 : f32
    %302 = vector.broadcast %cst_113 : f32 to vector<2x32xf32>
    %cst_114 = arith.constant 0.000000e+00 : f32
    %303 = vector.broadcast %cst_114 : f32 to vector<2x32xf32>
    %304 = vector.extract_strided_slice %301 {offsets = [0, 0], sizes = [2, 128], strides = [1, 1]} : vector<16x128xf32> to vector<2x128xf32>
    %cst_115 = arith.constant dense<0.000000e+00> : vector<2x128xf32>
    %305 = tpu.matmul %302, %296, %cst_115 {dimension_numbers = #tpu.dot_dimension_numbers<[1], [0], [0], [1], [0, 0, 1, 1], [], []>} : vector<2x32xf32>, vector<32x128xf32>, vector<2x128xf32> -> vector<2x128xf32>
    %306 = arith.addf %304, %305 : vector<2x128xf32>
    %307 = vector.extract_strided_slice %306 {offsets = [0, 0], sizes = [2, 32], strides = [1, 1]} : vector<2x128xf32> to vector<2x32xf32>
    %cst_116 = arith.constant 0.000000e+00 : f32
    %308 = vector.broadcast %cst_116 : f32 to vector<2x32xf32>
    %309 = arith.subf %308, %307 : vector<2x32xf32>
    %310 = math.exp %309 : vector<2x32xf32>
    %cst_117 = arith.constant 1.000000e+00 : f32
    %311 = vector.broadcast %cst_117 : f32 to vector<2x32xf32>
    %312 = arith.addf %311, %310 : vector<2x32xf32>
    %cst_118 = arith.constant 1.000000e+00 : f32
    %313 = vector.broadcast %cst_118 : f32 to vector<2x32xf32>
    %314 = arith.divf %313, %312 : vector<2x32xf32>
    %315 = vector.extract_strided_slice %306 {offsets = [0, 32], sizes = [2, 32], strides = [1, 1]} : vector<2x128xf32> to vector<2x32xf32>
    %cst_119 = arith.constant 0.000000e+00 : f32
    %316 = vector.broadcast %cst_119 : f32 to vector<2x32xf32>
    %317 = arith.subf %316, %315 : vector<2x32xf32>
    %318 = math.exp %317 : vector<2x32xf32>
    %cst_120 = arith.constant 1.000000e+00 : f32
    %319 = vector.broadcast %cst_120 : f32 to vector<2x32xf32>
    %320 = arith.addf %319, %318 : vector<2x32xf32>
    %cst_121 = arith.constant 1.000000e+00 : f32
    %321 = vector.broadcast %cst_121 : f32 to vector<2x32xf32>
    %322 = arith.divf %321, %320 : vector<2x32xf32>
    %323 = vector.extract_strided_slice %306 {offsets = [0, 64], sizes = [2, 32], strides = [1, 1]} : vector<2x128xf32> to vector<2x32xf32>
    %324 = math.tanh %323 : vector<2x32xf32>
    %325 = vector.extract_strided_slice %306 {offsets = [0, 96], sizes = [2, 32], strides = [1, 1]} : vector<2x128xf32> to vector<2x32xf32>
    %cst_122 = arith.constant 0.000000e+00 : f32
    %326 = vector.broadcast %cst_122 : f32 to vector<2x32xf32>
    %327 = arith.subf %326, %325 : vector<2x32xf32>
    %328 = math.exp %327 : vector<2x32xf32>
    %cst_123 = arith.constant 1.000000e+00 : f32
    %329 = vector.broadcast %cst_123 : f32 to vector<2x32xf32>
    %330 = arith.addf %329, %328 : vector<2x32xf32>
    %cst_124 = arith.constant 1.000000e+00 : f32
    %331 = vector.broadcast %cst_124 : f32 to vector<2x32xf32>
    %332 = arith.divf %331, %330 : vector<2x32xf32>
    %333 = arith.mulf %322, %303 : vector<2x32xf32>
    %334 = arith.mulf %314, %324 : vector<2x32xf32>
    %335 = arith.addf %333, %334 : vector<2x32xf32>
    %336 = math.tanh %335 : vector<2x32xf32>
    %337 = arith.mulf %332, %336 : vector<2x32xf32>
    %c0_125 = arith.constant 0 : index
    %c0_126 = arith.constant 0 : index
    %338 = vector.load %arg8[%c0_125, %c0_126] : memref<16x32xf32, #tpu.memory_space<vmem>>, vector<2x32xf32>
    tpu.vector_store %arg8[%c0_125, %c0_126], %337 {strides = array<i32>} : memref<16x32xf32, #tpu.memory_space<vmem>>, vector<2x32xf32>,
    %339 = vector.extract_strided_slice %301 {offsets = [2, 0], sizes = [2, 128], strides = [1, 1]} : vector<16x128xf32> to vector<2x128xf32>
    %cst_127 = arith.constant dense<0.000000e+00> : vector<2x128xf32>
    %340 = tpu.matmul %337, %296, %cst_127 {dimension_numbers = #tpu.dot_dimension_numbers<[1], [0], [0], [1], [0, 0, 1, 1], [], []>} : vector<2x32xf32>, vector<32x128xf32>, vector<2x128xf32> -> vector<2x128xf32>
    %341 = arith.addf %339, %340 : vector<2x128xf32>
    %342 = vector.extract_strided_slice %341 {offsets = [0, 0], sizes = [2, 32], strides = [1, 1]} : vector<2x128xf32> to vector<2x32xf32>
    %cst_128 = arith.constant 0.000000e+00 : f32
    %343 = vector.broadcast %cst_128 : f32 to vector<2x32xf32>
    %344 = arith.subf %343, %342 : vector<2x32xf32>
    %345 = math.exp %344 : vector<2x32xf32>
    %cst_129 = arith.constant 1.000000e+00 : f32
    %346 = vector.broadcast %cst_129 : f32 to vector<2x32xf32>
    %347 = arith.addf %346, %345 : vector<2x32xf32>
    %cst_130 = arith.constant 1.000000e+00 : f32
    %348 = vector.broadcast %cst_130 : f32 to vector<2x32xf32>
    %349 = arith.divf %348, %347 : vector<2x32xf32>
    %350 = vector.extract_strided_slice %341 {offsets = [0, 32], sizes = [2, 32], strides = [1, 1]} : vector<2x128xf32> to vector<2x32xf32>
    %cst_131 = arith.constant 0.000000e+00 : f32
    %351 = vector.broadcast %cst_131 : f32 to vector<2x32xf32>
    %352 = arith.subf %351, %350 : vector<2x32xf32>
    %353 = math.exp %352 : vector<2x32xf32>
    %cst_132 = arith.constant 1.000000e+00 : f32
    %354 = vector.broadcast %cst_132 : f32 to vector<2x32xf32>
    %355 = arith.addf %354, %353 : vector<2x32xf32>
    %cst_133 = arith.constant 1.000000e+00 : f32
    %356 = vector.broadcast %cst_133 : f32 to vector<2x32xf32>
    %357 = arith.divf %356, %355 : vector<2x32xf32>
    %358 = vector.extract_strided_slice %341 {offsets = [0, 64], sizes = [2, 32], strides = [1, 1]} : vector<2x128xf32> to vector<2x32xf32>
    %359 = math.tanh %358 : vector<2x32xf32>
    %360 = vector.extract_strided_slice %341 {offsets = [0, 96], sizes = [2, 32], strides = [1, 1]} : vector<2x128xf32> to vector<2x32xf32>
    %cst_134 = arith.constant 0.000000e+00 : f32
    %361 = vector.broadcast %cst_134 : f32 to vector<2x32xf32>
    %362 = arith.subf %361, %360 : vector<2x32xf32>
    %363 = math.exp %362 : vector<2x32xf32>
    %cst_135 = arith.constant 1.000000e+00 : f32
    %364 = vector.broadcast %cst_135 : f32 to vector<2x32xf32>
    %365 = arith.addf %364, %363 : vector<2x32xf32>
    %cst_136 = arith.constant 1.000000e+00 : f32
    %366 = vector.broadcast %cst_136 : f32 to vector<2x32xf32>
    %367 = arith.divf %366, %365 : vector<2x32xf32>
    %368 = arith.mulf %357, %335 : vector<2x32xf32>
    %369 = arith.mulf %349, %359 : vector<2x32xf32>
    %370 = arith.addf %368, %369 : vector<2x32xf32>
    %371 = math.tanh %370 : vector<2x32xf32>
    %372 = arith.mulf %367, %371 : vector<2x32xf32>
    %c2_137 = arith.constant 2 : index
    %c0_138 = arith.constant 0 : index
    %373 = vector.load %arg8[%c2_137, %c0_138] : memref<16x32xf32, #tpu.memory_space<vmem>>, vector<2x32xf32>
    tpu.vector_store %arg8[%c2_137, %c0_138], %372 {strides = array<i32>} : memref<16x32xf32, #tpu.memory_space<vmem>>, vector<2x32xf32>,
    %374 = vector.extract_strided_slice %301 {offsets = [4, 0], sizes = [2, 128], strides = [1, 1]} : vector<16x128xf32> to vector<2x128xf32>
    %cst_139 = arith.constant dense<0.000000e+00> : vector<2x128xf32>
    %375 = tpu.matmul %372, %296, %cst_139 {dimension_numbers = #tpu.dot_dimension_numbers<[1], [0], [0], [1], [0, 0, 1, 1], [], []>} : vector<2x32xf32>, vector<32x128xf32>, vector<2x128xf32> -> vector<2x128xf32>
    %376 = arith.addf %374, %375 : vector<2x128xf32>
    %377 = vector.extract_strided_slice %376 {offsets = [0, 0], sizes = [2, 32], strides = [1, 1]} : vector<2x128xf32> to vector<2x32xf32>
    %cst_140 = arith.constant 0.000000e+00 : f32
    %378 = vector.broadcast %cst_140 : f32 to vector<2x32xf32>
    %379 = arith.subf %378, %377 : vector<2x32xf32>
    %380 = math.exp %379 : vector<2x32xf32>
    %cst_141 = arith.constant 1.000000e+00 : f32
    %381 = vector.broadcast %cst_141 : f32 to vector<2x32xf32>
    %382 = arith.addf %381, %380 : vector<2x32xf32>
    %cst_142 = arith.constant 1.000000e+00 : f32
    %383 = vector.broadcast %cst_142 : f32 to vector<2x32xf32>
    %384 = arith.divf %383, %382 : vector<2x32xf32>
    %385 = vector.extract_strided_slice %376 {offsets = [0, 32], sizes = [2, 32], strides = [1, 1]} : vector<2x128xf32> to vector<2x32xf32>
    %cst_143 = arith.constant 0.000000e+00 : f32
    %386 = vector.broadcast %cst_143 : f32 to vector<2x32xf32>
    %387 = arith.subf %386, %385 : vector<2x32xf32>
    %388 = math.exp %387 : vector<2x32xf32>
    %cst_144 = arith.constant 1.000000e+00 : f32
    %389 = vector.broadcast %cst_144 : f32 to vector<2x32xf32>
    %390 = arith.addf %389, %388 : vector<2x32xf32>
    %cst_145 = arith.constant 1.000000e+00 : f32
    %391 = vector.broadcast %cst_145 : f32 to vector<2x32xf32>
    %392 = arith.divf %391, %390 : vector<2x32xf32>
    %393 = vector.extract_strided_slice %376 {offsets = [0, 64], sizes = [2, 32], strides = [1, 1]} : vector<2x128xf32> to vector<2x32xf32>
    %394 = math.tanh %393 : vector<2x32xf32>
    %395 = vector.extract_strided_slice %376 {offsets = [0, 96], sizes = [2, 32], strides = [1, 1]} : vector<2x128xf32> to vector<2x32xf32>
    %cst_146 = arith.constant 0.000000e+00 : f32
    %396 = vector.broadcast %cst_146 : f32 to vector<2x32xf32>
    %397 = arith.subf %396, %395 : vector<2x32xf32>
    %398 = math.exp %397 : vector<2x32xf32>
    %cst_147 = arith.constant 1.000000e+00 : f32
    %399 = vector.broadcast %cst_147 : f32 to vector<2x32xf32>
    %400 = arith.addf %399, %398 : vector<2x32xf32>
    %cst_148 = arith.constant 1.000000e+00 : f32
    %401 = vector.broadcast %cst_148 : f32 to vector<2x32xf32>
    %402 = arith.divf %401, %400 : vector<2x32xf32>
    %403 = arith.mulf %392, %370 : vector<2x32xf32>
    %404 = arith.mulf %384, %394 : vector<2x32xf32>
    %405 = arith.addf %403, %404 : vector<2x32xf32>
    %406 = math.tanh %405 : vector<2x32xf32>
    %407 = arith.mulf %402, %406 : vector<2x32xf32>
    %c4_149 = arith.constant 4 : index
    %c0_150 = arith.constant 0 : index
    %408 = vector.load %arg8[%c4_149, %c0_150] : memref<16x32xf32, #tpu.memory_space<vmem>>, vector<2x32xf32>
    tpu.vector_store %arg8[%c4_149, %c0_150], %407 {strides = array<i32>} : memref<16x32xf32, #tpu.memory_space<vmem>>, vector<2x32xf32>,
    %409 = vector.extract_strided_slice %301 {offsets = [6, 0], sizes = [2, 128], strides = [1, 1]} : vector<16x128xf32> to vector<2x128xf32>
    %cst_151 = arith.constant dense<0.000000e+00> : vector<2x128xf32>
    %410 = tpu.matmul %407, %296, %cst_151 {dimension_numbers = #tpu.dot_dimension_numbers<[1], [0], [0], [1], [0, 0, 1, 1], [], []>} : vector<2x32xf32>, vector<32x128xf32>, vector<2x128xf32> -> vector<2x128xf32>
    %411 = arith.addf %409, %410 : vector<2x128xf32>
    %412 = vector.extract_strided_slice %411 {offsets = [0, 0], sizes = [2, 32], strides = [1, 1]} : vector<2x128xf32> to vector<2x32xf32>
    %cst_152 = arith.constant 0.000000e+00 : f32
    %413 = vector.broadcast %cst_152 : f32 to vector<2x32xf32>
    %414 = arith.subf %413, %412 : vector<2x32xf32>
    %415 = math.exp %414 : vector<2x32xf32>
    %cst_153 = arith.constant 1.000000e+00 : f32
    %416 = vector.broadcast %cst_153 : f32 to vector<2x32xf32>
    %417 = arith.addf %416, %415 : vector<2x32xf32>
    %cst_154 = arith.constant 1.000000e+00 : f32
    %418 = vector.broadcast %cst_154 : f32 to vector<2x32xf32>
    %419 = arith.divf %418, %417 : vector<2x32xf32>
    %420 = vector.extract_strided_slice %411 {offsets = [0, 32], sizes = [2, 32], strides = [1, 1]} : vector<2x128xf32> to vector<2x32xf32>
    %cst_155 = arith.constant 0.000000e+00 : f32
    %421 = vector.broadcast %cst_155 : f32 to vector<2x32xf32>
    %422 = arith.subf %421, %420 : vector<2x32xf32>
    %423 = math.exp %422 : vector<2x32xf32>
    %cst_156 = arith.constant 1.000000e+00 : f32
    %424 = vector.broadcast %cst_156 : f32 to vector<2x32xf32>
    %425 = arith.addf %424, %423 : vector<2x32xf32>
    %cst_157 = arith.constant 1.000000e+00 : f32
    %426 = vector.broadcast %cst_157 : f32 to vector<2x32xf32>
    %427 = arith.divf %426, %425 : vector<2x32xf32>
    %428 = vector.extract_strided_slice %411 {offsets = [0, 64], sizes = [2, 32], strides = [1, 1]} : vector<2x128xf32> to vector<2x32xf32>
    %429 = math.tanh %428 : vector<2x32xf32>
    %430 = vector.extract_strided_slice %411 {offsets = [0, 96], sizes = [2, 32], strides = [1, 1]} : vector<2x128xf32> to vector<2x32xf32>
    %cst_158 = arith.constant 0.000000e+00 : f32
    %431 = vector.broadcast %cst_158 : f32 to vector<2x32xf32>
    %432 = arith.subf %431, %430 : vector<2x32xf32>
    %433 = math.exp %432 : vector<2x32xf32>
    %cst_159 = arith.constant 1.000000e+00 : f32
    %434 = vector.broadcast %cst_159 : f32 to vector<2x32xf32>
    %435 = arith.addf %434, %433 : vector<2x32xf32>
    %cst_160 = arith.constant 1.000000e+00 : f32
    %436 = vector.broadcast %cst_160 : f32 to vector<2x32xf32>
    %437 = arith.divf %436, %435 : vector<2x32xf32>
    %438 = arith.mulf %427, %405 : vector<2x32xf32>
    %439 = arith.mulf %419, %429 : vector<2x32xf32>
    %440 = arith.addf %438, %439 : vector<2x32xf32>
    %441 = math.tanh %440 : vector<2x32xf32>
    %442 = arith.mulf %437, %441 : vector<2x32xf32>
    %c6_161 = arith.constant 6 : index
    %c0_162 = arith.constant 0 : index
    %443 = vector.load %arg8[%c6_161, %c0_162] : memref<16x32xf32, #tpu.memory_space<vmem>>, vector<2x32xf32>
    tpu.vector_store %arg8[%c6_161, %c0_162], %442 {strides = array<i32>} : memref<16x32xf32, #tpu.memory_space<vmem>>, vector<2x32xf32>,
    %444 = vector.extract_strided_slice %301 {offsets = [8, 0], sizes = [2, 128], strides = [1, 1]} : vector<16x128xf32> to vector<2x128xf32>
    %cst_163 = arith.constant dense<0.000000e+00> : vector<2x128xf32>
    %445 = tpu.matmul %442, %296, %cst_163 {dimension_numbers = #tpu.dot_dimension_numbers<[1], [0], [0], [1], [0, 0, 1, 1], [], []>} : vector<2x32xf32>, vector<32x128xf32>, vector<2x128xf32> -> vector<2x128xf32>
    %446 = arith.addf %444, %445 : vector<2x128xf32>
    %447 = vector.extract_strided_slice %446 {offsets = [0, 0], sizes = [2, 32], strides = [1, 1]} : vector<2x128xf32> to vector<2x32xf32>
    %cst_164 = arith.constant 0.000000e+00 : f32
    %448 = vector.broadcast %cst_164 : f32 to vector<2x32xf32>
    %449 = arith.subf %448, %447 : vector<2x32xf32>
    %450 = math.exp %449 : vector<2x32xf32>
    %cst_165 = arith.constant 1.000000e+00 : f32
    %451 = vector.broadcast %cst_165 : f32 to vector<2x32xf32>
    %452 = arith.addf %451, %450 : vector<2x32xf32>
    %cst_166 = arith.constant 1.000000e+00 : f32
    %453 = vector.broadcast %cst_166 : f32 to vector<2x32xf32>
    %454 = arith.divf %453, %452 : vector<2x32xf32>
    %455 = vector.extract_strided_slice %446 {offsets = [0, 32], sizes = [2, 32], strides = [1, 1]} : vector<2x128xf32> to vector<2x32xf32>
    %cst_167 = arith.constant 0.000000e+00 : f32
    %456 = vector.broadcast %cst_167 : f32 to vector<2x32xf32>
    %457 = arith.subf %456, %455 : vector<2x32xf32>
    %458 = math.exp %457 : vector<2x32xf32>
    %cst_168 = arith.constant 1.000000e+00 : f32
    %459 = vector.broadcast %cst_168 : f32 to vector<2x32xf32>
    %460 = arith.addf %459, %458 : vector<2x32xf32>
    %cst_169 = arith.constant 1.000000e+00 : f32
    %461 = vector.broadcast %cst_169 : f32 to vector<2x32xf32>
    %462 = arith.divf %461, %460 : vector<2x32xf32>
    %463 = vector.extract_strided_slice %446 {offsets = [0, 64], sizes = [2, 32], strides = [1, 1]} : vector<2x128xf32> to vector<2x32xf32>
    %464 = math.tanh %463 : vector<2x32xf32>
    %465 = vector.extract_strided_slice %446 {offsets = [0, 96], sizes = [2, 32], strides = [1, 1]} : vector<2x128xf32> to vector<2x32xf32>
    %cst_170 = arith.constant 0.000000e+00 : f32
    %466 = vector.broadcast %cst_170 : f32 to vector<2x32xf32>
    %467 = arith.subf %466, %465 : vector<2x32xf32>
    %468 = math.exp %467 : vector<2x32xf32>
    %cst_171 = arith.constant 1.000000e+00 : f32
    %469 = vector.broadcast %cst_171 : f32 to vector<2x32xf32>
    %470 = arith.addf %469, %468 : vector<2x32xf32>
    %cst_172 = arith.constant 1.000000e+00 : f32
    %471 = vector.broadcast %cst_172 : f32 to vector<2x32xf32>
    %472 = arith.divf %471, %470 : vector<2x32xf32>
    %473 = arith.mulf %462, %440 : vector<2x32xf32>
    %474 = arith.mulf %454, %464 : vector<2x32xf32>
    %475 = arith.addf %473, %474 : vector<2x32xf32>
    %476 = math.tanh %475 : vector<2x32xf32>
    %477 = arith.mulf %472, %476 : vector<2x32xf32>
    %c8_173 = arith.constant 8 : index
    %c0_174 = arith.constant 0 : index
    %478 = vector.load %arg8[%c8_173, %c0_174] : memref<16x32xf32, #tpu.memory_space<vmem>>, vector<2x32xf32>
    tpu.vector_store %arg8[%c8_173, %c0_174], %477 {strides = array<i32>} : memref<16x32xf32, #tpu.memory_space<vmem>>, vector<2x32xf32>,
    %479 = vector.extract_strided_slice %301 {offsets = [10, 0], sizes = [2, 128], strides = [1, 1]} : vector<16x128xf32> to vector<2x128xf32>
    %cst_175 = arith.constant dense<0.000000e+00> : vector<2x128xf32>
    %480 = tpu.matmul %477, %296, %cst_175 {dimension_numbers = #tpu.dot_dimension_numbers<[1], [0], [0], [1], [0, 0, 1, 1], [], []>} : vector<2x32xf32>, vector<32x128xf32>, vector<2x128xf32> -> vector<2x128xf32>
    %481 = arith.addf %479, %480 : vector<2x128xf32>
    %482 = vector.extract_strided_slice %481 {offsets = [0, 0], sizes = [2, 32], strides = [1, 1]} : vector<2x128xf32> to vector<2x32xf32>
    %cst_176 = arith.constant 0.000000e+00 : f32
    %483 = vector.broadcast %cst_176 : f32 to vector<2x32xf32>
    %484 = arith.subf %483, %482 : vector<2x32xf32>
    %485 = math.exp %484 : vector<2x32xf32>
    %cst_177 = arith.constant 1.000000e+00 : f32
    %486 = vector.broadcast %cst_177 : f32 to vector<2x32xf32>
    %487 = arith.addf %486, %485 : vector<2x32xf32>
    %cst_178 = arith.constant 1.000000e+00 : f32
    %488 = vector.broadcast %cst_178 : f32 to vector<2x32xf32>
    %489 = arith.divf %488, %487 : vector<2x32xf32>
    %490 = vector.extract_strided_slice %481 {offsets = [0, 32], sizes = [2, 32], strides = [1, 1]} : vector<2x128xf32> to vector<2x32xf32>
    %cst_179 = arith.constant 0.000000e+00 : f32
    %491 = vector.broadcast %cst_179 : f32 to vector<2x32xf32>
    %492 = arith.subf %491, %490 : vector<2x32xf32>
    %493 = math.exp %492 : vector<2x32xf32>
    %cst_180 = arith.constant 1.000000e+00 : f32
    %494 = vector.broadcast %cst_180 : f32 to vector<2x32xf32>
    %495 = arith.addf %494, %493 : vector<2x32xf32>
    %cst_181 = arith.constant 1.000000e+00 : f32
    %496 = vector.broadcast %cst_181 : f32 to vector<2x32xf32>
    %497 = arith.divf %496, %495 : vector<2x32xf32>
    %498 = vector.extract_strided_slice %481 {offsets = [0, 64], sizes = [2, 32], strides = [1, 1]} : vector<2x128xf32> to vector<2x32xf32>
    %499 = math.tanh %498 : vector<2x32xf32>
    %500 = vector.extract_strided_slice %481 {offsets = [0, 96], sizes = [2, 32], strides = [1, 1]} : vector<2x128xf32> to vector<2x32xf32>
    %cst_182 = arith.constant 0.000000e+00 : f32
    %501 = vector.broadcast %cst_182 : f32 to vector<2x32xf32>
    %502 = arith.subf %501, %500 : vector<2x32xf32>
    %503 = math.exp %502 : vector<2x32xf32>
    %cst_183 = arith.constant 1.000000e+00 : f32
    %504 = vector.broadcast %cst_183 : f32 to vector<2x32xf32>
    %505 = arith.addf %504, %503 : vector<2x32xf32>
    %cst_184 = arith.constant 1.000000e+00 : f32
    %506 = vector.broadcast %cst_184 : f32 to vector<2x32xf32>
    %507 = arith.divf %506, %505 : vector<2x32xf32>
    %508 = arith.mulf %497, %475 : vector<2x32xf32>
    %509 = arith.mulf %489, %499 : vector<2x32xf32>
    %510 = arith.addf %508, %509 : vector<2x32xf32>
    %511 = math.tanh %510 : vector<2x32xf32>
    %512 = arith.mulf %507, %511 : vector<2x32xf32>
    %c10_185 = arith.constant 10 : index
    %c0_186 = arith.constant 0 : index
    %513 = vector.load %arg8[%c10_185, %c0_186] : memref<16x32xf32, #tpu.memory_space<vmem>>, vector<2x32xf32>
    tpu.vector_store %arg8[%c10_185, %c0_186], %512 {strides = array<i32>} : memref<16x32xf32, #tpu.memory_space<vmem>>, vector<2x32xf32>,
    %514 = vector.extract_strided_slice %301 {offsets = [12, 0], sizes = [2, 128], strides = [1, 1]} : vector<16x128xf32> to vector<2x128xf32>
    %cst_187 = arith.constant dense<0.000000e+00> : vector<2x128xf32>
    %515 = tpu.matmul %512, %296, %cst_187 {dimension_numbers = #tpu.dot_dimension_numbers<[1], [0], [0], [1], [0, 0, 1, 1], [], []>} : vector<2x32xf32>, vector<32x128xf32>, vector<2x128xf32> -> vector<2x128xf32>
    %516 = arith.addf %514, %515 : vector<2x128xf32>
    %517 = vector.extract_strided_slice %516 {offsets = [0, 0], sizes = [2, 32], strides = [1, 1]} : vector<2x128xf32> to vector<2x32xf32>
    %cst_188 = arith.constant 0.000000e+00 : f32
    %518 = vector.broadcast %cst_188 : f32 to vector<2x32xf32>
    %519 = arith.subf %518, %517 : vector<2x32xf32>
    %520 = math.exp %519 : vector<2x32xf32>
    %cst_189 = arith.constant 1.000000e+00 : f32
    %521 = vector.broadcast %cst_189 : f32 to vector<2x32xf32>
    %522 = arith.addf %521, %520 : vector<2x32xf32>
    %cst_190 = arith.constant 1.000000e+00 : f32
    %523 = vector.broadcast %cst_190 : f32 to vector<2x32xf32>
    %524 = arith.divf %523, %522 : vector<2x32xf32>
    %525 = vector.extract_strided_slice %516 {offsets = [0, 32], sizes = [2, 32], strides = [1, 1]} : vector<2x128xf32> to vector<2x32xf32>
    %cst_191 = arith.constant 0.000000e+00 : f32
    %526 = vector.broadcast %cst_191 : f32 to vector<2x32xf32>
    %527 = arith.subf %526, %525 : vector<2x32xf32>
    %528 = math.exp %527 : vector<2x32xf32>
    %cst_192 = arith.constant 1.000000e+00 : f32
    %529 = vector.broadcast %cst_192 : f32 to vector<2x32xf32>
    %530 = arith.addf %529, %528 : vector<2x32xf32>
    %cst_193 = arith.constant 1.000000e+00 : f32
    %531 = vector.broadcast %cst_193 : f32 to vector<2x32xf32>
    %532 = arith.divf %531, %530 : vector<2x32xf32>
    %533 = vector.extract_strided_slice %516 {offsets = [0, 64], sizes = [2, 32], strides = [1, 1]} : vector<2x128xf32> to vector<2x32xf32>
    %534 = math.tanh %533 : vector<2x32xf32>
    %535 = vector.extract_strided_slice %516 {offsets = [0, 96], sizes = [2, 32], strides = [1, 1]} : vector<2x128xf32> to vector<2x32xf32>
    %cst_194 = arith.constant 0.000000e+00 : f32
    %536 = vector.broadcast %cst_194 : f32 to vector<2x32xf32>
    %537 = arith.subf %536, %535 : vector<2x32xf32>
    %538 = math.exp %537 : vector<2x32xf32>
    %cst_195 = arith.constant 1.000000e+00 : f32
    %539 = vector.broadcast %cst_195 : f32 to vector<2x32xf32>
    %540 = arith.addf %539, %538 : vector<2x32xf32>
    %cst_196 = arith.constant 1.000000e+00 : f32
    %541 = vector.broadcast %cst_196 : f32 to vector<2x32xf32>
    %542 = arith.divf %541, %540 : vector<2x32xf32>
    %543 = arith.mulf %532, %510 : vector<2x32xf32>
    %544 = arith.mulf %524, %534 : vector<2x32xf32>
    %545 = arith.addf %543, %544 : vector<2x32xf32>
    %546 = math.tanh %545 : vector<2x32xf32>
    %547 = arith.mulf %542, %546 : vector<2x32xf32>
    %c12_197 = arith.constant 12 : index
    %c0_198 = arith.constant 0 : index
    %548 = vector.load %arg8[%c12_197, %c0_198] : memref<16x32xf32, #tpu.memory_space<vmem>>, vector<2x32xf32>
    tpu.vector_store %arg8[%c12_197, %c0_198], %547 {strides = array<i32>} : memref<16x32xf32, #tpu.memory_space<vmem>>, vector<2x32xf32>,
    %549 = vector.extract_strided_slice %301 {offsets = [14, 0], sizes = [2, 128], strides = [1, 1]} : vector<16x128xf32> to vector<2x128xf32>
    %cst_199 = arith.constant dense<0.000000e+00> : vector<2x128xf32>
    %550 = tpu.matmul %547, %296, %cst_199 {dimension_numbers = #tpu.dot_dimension_numbers<[1], [0], [0], [1], [0, 0, 1, 1], [], []>} : vector<2x32xf32>, vector<32x128xf32>, vector<2x128xf32> -> vector<2x128xf32>
    %551 = arith.addf %549, %550 : vector<2x128xf32>
    %552 = vector.extract_strided_slice %551 {offsets = [0, 0], sizes = [2, 32], strides = [1, 1]} : vector<2x128xf32> to vector<2x32xf32>
    %cst_200 = arith.constant 0.000000e+00 : f32
    %553 = vector.broadcast %cst_200 : f32 to vector<2x32xf32>
    %554 = arith.subf %553, %552 : vector<2x32xf32>
    %555 = math.exp %554 : vector<2x32xf32>
    %cst_201 = arith.constant 1.000000e+00 : f32
    %556 = vector.broadcast %cst_201 : f32 to vector<2x32xf32>
    %557 = arith.addf %556, %555 : vector<2x32xf32>
    %cst_202 = arith.constant 1.000000e+00 : f32
    %558 = vector.broadcast %cst_202 : f32 to vector<2x32xf32>
    %559 = arith.divf %558, %557 : vector<2x32xf32>
    %560 = vector.extract_strided_slice %551 {offsets = [0, 32], sizes = [2, 32], strides = [1, 1]} : vector<2x128xf32> to vector<2x32xf32>
    %cst_203 = arith.constant 0.000000e+00 : f32
    %561 = vector.broadcast %cst_203 : f32 to vector<2x32xf32>
    %562 = arith.subf %561, %560 : vector<2x32xf32>
    %563 = math.exp %562 : vector<2x32xf32>
    %cst_204 = arith.constant 1.000000e+00 : f32
    %564 = vector.broadcast %cst_204 : f32 to vector<2x32xf32>
    %565 = arith.addf %564, %563 : vector<2x32xf32>
    %cst_205 = arith.constant 1.000000e+00 : f32
    %566 = vector.broadcast %cst_205 : f32 to vector<2x32xf32>
    %567 = arith.divf %566, %565 : vector<2x32xf32>
    %568 = vector.extract_strided_slice %551 {offsets = [0, 64], sizes = [2, 32], strides = [1, 1]} : vector<2x128xf32> to vector<2x32xf32>
    %569 = math.tanh %568 : vector<2x32xf32>
    %570 = vector.extract_strided_slice %551 {offsets = [0, 96], sizes = [2, 32], strides = [1, 1]} : vector<2x128xf32> to vector<2x32xf32>
    %cst_206 = arith.constant 0.000000e+00 : f32
    %571 = vector.broadcast %cst_206 : f32 to vector<2x32xf32>
    %572 = arith.subf %571, %570 : vector<2x32xf32>
    %573 = math.exp %572 : vector<2x32xf32>
    %cst_207 = arith.constant 1.000000e+00 : f32
    %574 = vector.broadcast %cst_207 : f32 to vector<2x32xf32>
    %575 = arith.addf %574, %573 : vector<2x32xf32>
    %cst_208 = arith.constant 1.000000e+00 : f32
    %576 = vector.broadcast %cst_208 : f32 to vector<2x32xf32>
    %577 = arith.divf %576, %575 : vector<2x32xf32>
    %578 = arith.mulf %567, %545 : vector<2x32xf32>
    %579 = arith.mulf %559, %569 : vector<2x32xf32>
    %580 = arith.addf %578, %579 : vector<2x32xf32>
    %581 = math.tanh %580 : vector<2x32xf32>
    %582 = arith.mulf %577, %581 : vector<2x32xf32>
    %c14_209 = arith.constant 14 : index
    %c0_210 = arith.constant 0 : index
    %583 = vector.load %arg8[%c14_209, %c0_210] : memref<16x32xf32, #tpu.memory_space<vmem>>, vector<2x32xf32>
    tpu.vector_store %arg8[%c14_209, %c0_210], %582 {strides = array<i32>} : memref<16x32xf32, #tpu.memory_space<vmem>>, vector<2x32xf32>,
    %c1 = arith.constant 1 : index
    %c0_211 = arith.constant 0 : index
    %c0_212 = arith.constant 0 : index
    %584 = vector.load %arg9[%c1, %c0_211, %c0_212] : memref<2x2x32xf32, #tpu.memory_space<vmem>>, vector<1x2x32xf32>
    %585 = vector.shape_cast %584 : vector<1x2x32xf32> to vector<2x32xf32>
    %586 = vector.shape_cast %582 : vector<2x32xf32> to vector<1x2x32xf32>
    tpu.vector_store %arg9[%c1, %c0_211, %c0_212], %586 {strides = array<i32>} : memref<2x2x32xf32, #tpu.memory_space<vmem>>, vector<1x2x32xf32>,
    %c1_213 = arith.constant 1 : index
    %c0_214 = arith.constant 0 : index
    %c0_215 = arith.constant 0 : index
    %587 = vector.load %arg10[%c1_213, %c0_214, %c0_215] : memref<2x2x32xf32, #tpu.memory_space<vmem>>, vector<1x2x32xf32>
    %588 = vector.shape_cast %587 : vector<1x2x32xf32> to vector<2x32xf32>
    %589 = vector.shape_cast %580 : vector<2x32xf32> to vector<1x2x32xf32>
    tpu.vector_store %arg10[%c1_213, %c0_214, %c0_215], %589 {strides = array<i32>} : memref<2x2x32xf32, #tpu.memory_space<vmem>>, vector<1x2x32xf32>,
    return
  }
  func.func @transform_0(%arg0: i32) -> (i32, i32) {
    %c0_i32 = arith.constant 0 : i32
    %c0_i32_0 = arith.constant 0 : i32
    %c0_i32_1 = arith.constant 0 : i32
    return %c0_i32, %c0_i32_0 : i32, i32
  }
  func.func @transform_1(%arg0: i32) -> (i32, i32) {
    %c0_i32 = arith.constant 0 : i32
    %c0_i32_0 = arith.constant 0 : i32
    %c0_i32_1 = arith.constant 0 : i32
    return %c0_i32, %c0_i32_0 : i32, i32
  }
  func.func @transform_2(%arg0: i32) -> (i32, i32) {
    %c0_i32 = arith.constant 0 : i32
    %c0_i32_0 = arith.constant 0 : i32
    %c0_i32_1 = arith.constant 0 : i32
    return %c0_i32, %c0_i32_0 : i32, i32
  }
  func.func @transform_3(%arg0: i32) -> (i32, i32) {
    %c0_i32 = arith.constant 0 : i32
    %c0_i32_0 = arith.constant 0 : i32
    %c0_i32_1 = arith.constant 0 : i32
    return %c0_i32, %c0_i32_0 : i32, i32
  }
  func.func @transform_4(%arg0: i32) -> (i32, i32) {
    %c0_i32 = arith.constant 0 : i32
    %c0_i32_0 = arith.constant 0 : i32
    %c0_i32_1 = arith.constant 0 : i32
    return %c0_i32, %c0_i32_0 : i32, i32
  }
  func.func @transform_5(%arg0: i32) -> (i32, i32) {
    %c0_i32 = arith.constant 0 : i32
    %c0_i32_0 = arith.constant 0 : i32
    %c0_i32_1 = arith.constant 0 : i32
    return %c0_i32, %c0_i32_0 : i32, i32
  }
  func.func @transform_6(%arg0: i32) -> (i32, i32) {
    %c0_i32 = arith.constant 0 : i32
    %c0_i32_0 = arith.constant 0 : i32
    %c0_i32_1 = arith.constant 0 : i32
    return %c0_i32, %c0_i32_0 : i32, i32
  }
  func.func @transform_7(%arg0: i32) -> (i32, i32) {
    %c0_i32 = arith.constant 0 : i32
    %c0_i32_0 = arith.constant 0 : i32
    %c0_i32_1 = arith.constant 0 : i32
    return %c0_i32, %c0_i32_0 : i32, i32
  }
  func.func @transform_8(%arg0: i32) -> (i32, i32, i32) {
    %c0_i32 = arith.constant 0 : i32
    %c0_i32_0 = arith.constant 0 : i32
    %c0_i32_1 = arith.constant 0 : i32
    %c0_i32_2 = arith.constant 0 : i32
    return %c0_i32, %c0_i32_0, %c0_i32_1 : i32, i32, i32
  }
  func.func @transform_9(%arg0: i32) -> (i32, i32, i32) {
    %c0_i32 = arith.constant 0 : i32
    %c0_i32_0 = arith.constant 0 : i32
    %c0_i32_1 = arith.constant 0 : i32
    %c0_i32_2 = arith.constant 0 : i32
    return %c0_i32, %c0_i32_0, %c0_i32_1 : i32, i32, i32
  }
}

</mosaic_0001>

<bundles_post_ra>
// kernel: lrcn_forward.1
= control target key start
LH: loop header
LB: loop body
LE: loop exit
PB: predicated region body
PF: predicated region fallthrough
CT: control target
= control target key end

     0   :  { %15 = vsyncpa [#allocation4], 0  ;;  %s3202_s0 = inlined_call_operand.hbm [shape: f32[16,32], index: 0, kind: input, shape index: {}]   ;;  %s3203_s1 = inlined_call_operand.hbm [shape: f32[32,128], index: 1, kind: input, shape index: {}]   ;;  %s3204_s2 = inlined_call_operand.hbm [shape: f32[32,128], index: 2, kind: input, shape index: {}]   ;;  %s3205_s3 = inlined_call_operand.vmem [shape: f32[1,128], index: 3, kind: input, shape index: {}]   ;;  %s3206_s4 = inlined_call_operand.hbm [shape: f32[32,128], index: 4, kind: input, shape index: {}]   ;;  %s3207_s5 = inlined_call_operand.hbm [shape: f32[32,128], index: 5, kind: input, shape index: {}]   ;;  %s3208_s6 = inlined_call_operand.vmem [shape: f32[1,128], index: 6, kind: input, shape index: {}]   ;;  %s3209_s7 = inlined_call_operand.hbm [shape: f32[16,32], index: 7, kind: output, shape index: {0}]   ;;  %s3210_s8 = inlined_call_operand.hbm [shape: f32[2,2,32], index: 8, kind: output, shape index: {1}]   ;;  %s3211_s9 = inlined_call_operand.hbm [shape: f32[2,2,32], index: 9, kind: output, shape index: {2}]  }
   0x1   :  { %16 = vsyncpa [#allocation7], 0 }
   0x2   :  { %17 = vsyncpa [#allocation10], 0 }
   0x3   :  { %18 = vsyncpa [#allocation5], 0 }
   0x4   :  { %19 = vsyncpa [#allocation14], 0  ;;  %s2727_s30 = smov [#allocation6]   ;;  %s2728_s11 = smov [#allocation9]  }
   0x5   :  { %s37_s10 = sshll.u32 %s2727_s30, 4  ;;  %s63_s12 = sshll.u32 %s2728_s11, 4  ;;  %s38_s10 = int_to_ptr.vmem [resolvable:$true] %s37_s10  ;;  %s64_s12 = int_to_ptr.vmem [resolvable:$true] %s63_s12 }
   0x6   :  { %s2565_s13 = scalar_lea.vmem %s38_s10, 512  ;;  %p2570_p1 = scmp.lt.s32.totalorder %s38_s10, %s38_s10 }
   0x7   :  { %p2566_p0 = scmp.ne.s32.totalorder %s38_s10, %s2565_s13  ;;  %p2571_p2 = scmp.lt.s32.totalorder %s2565_s13, %s2565_s13 }
   0x9   :  { %p2572_p3 = por %p2571_p2, %p2570_p1 }
   0xb   :  { %p2573_p4 = pnand %p2572_p3, %p2566_p0 }
   0xd   :  { %2576 = shalt.err (!%p2573_p4)
}
   0xe   :  { %s2729_s14 = smov 128   ;;  %s2730_s15 = smov 8  }
   0xf   :  { %43 = dma.hbm_to_vmem [thread:$0]  %s3203_s1, 512, %s38_s10, [#allocation7], %s2729_s14, %s2729_s14, %s2730_s15  }
  0x10   :  { %s2585_s18 = scalar_lea.vmem %s64_s12, 512  ;;  %p2590_p6 = scmp.lt.s32.totalorder %s64_s12, %s64_s12 }
  0x11   :  { %p2586_p5 = scmp.ne.s32.totalorder %s64_s12, %s2585_s18  ;;  %p2591_p7 = scmp.lt.s32.totalorder %s2585_s18, %s2585_s18 }
  0x13   :  { %p2592_p8 = por %p2591_p7, %p2590_p6 }
  0x15   :  { %p2593_p9 = pnand %p2592_p8, %p2586_p5 }
  0x17   :  { %2596 = shalt.err (!%p2593_p9)
}
  0x18   :  { %69 = dma.hbm_to_vmem [thread:$0]  %s3206_s4, 512, %s64_s12, [#allocation10], %s2729_s14, %s2729_s14, %s2730_s15  }
  0x19   :  { %s2731_s21 = smov [#allocation3]   ;;  %s2732_s23 = smov [#allocation8]  }
  0x1a   :  { %s25_s22 = sshll.u32 %s2731_s21, 4  ;;  %s49_s24 = sshll.u32 %s2732_s23, 4  ;;  %s26_s22 = int_to_ptr.vmem [resolvable:$true] %s25_s22  ;;  %s50_s24 = int_to_ptr.vmem [resolvable:$true] %s49_s24 }
  0x1b   :  { %s2605_s1 = scalar_lea.vmem %s26_s22, 256  ;;  %p2610_p11 = scmp.lt.s32.totalorder %s26_s22, %s26_s22 }
  0x1c   :  { %p2606_p10 = scmp.ne.s32.totalorder %s26_s22, %s2605_s1  ;;  %p2611_p12 = scmp.lt.s32.totalorder %s2605_s1, %s2605_s1 }
  0x1e   :  { %p2612_p13 = por %p2611_p12, %p2610_p11 }
  0x20   :  { %p2613_p0 = pnand %p2612_p13, %p2606_p10 }
  0x22   :  { %2616 = shalt.err (!%p2613_p0)
}
  0x23   :  { %31 = dma.hbm_to_vmem [thread:$0]  %s3202_s0, 256, %s26_s22, [#allocation4], %s2729_s14, %s2729_s14, %s2730_s15  }
  0x24   :  { %s2625_s4 = scalar_lea.vmem %s50_s24, 512  ;;  %p2630_p2 = scmp.lt.s32.totalorder %s50_s24, %s50_s24 }
  0x25   :  { %p2626_p1 = scmp.ne.s32.totalorder %s50_s24, %s2625_s4  ;;  %p2631_p3 = scmp.lt.s32.totalorder %s2625_s4, %s2625_s4 }
  0x27   :  { %p2632_p4 = por %p2631_p3, %p2630_p2 }
  0x29   :  { %p2633_p5 = pnand %p2632_p4, %p2626_p1 }
  0x2b   :  { %2636 = shalt.err (!%p2633_p5)
}
  0x2c   :  { %55 = dma.hbm_to_vmem [thread:$0]  %s3204_s2, 512, %s50_s24, [#allocation7], %s2729_s14, %s2729_s14, %s2730_s15  }
  0x2d   :  { %s2733_s29 = smov [#allocation11]  }
  0x2e   :  { %s75_s30 = sshll.u32 %s2733_s29, 4  ;;  %s76_s30 = int_to_ptr.vmem [resolvable:$true] %s75_s30 }
  0x2f   :  { %s2645_s10 = scalar_lea.vmem %s76_s30, 512  ;;  %p2650_p7 = scmp.lt.s32.totalorder %s76_s30, %s76_s30 }
  0x30   :  { %p2646_p6 = scmp.ne.s32.totalorder %s76_s30, %s2645_s10  ;;  %p2651_p8 = scmp.lt.s32.totalorder %s2645_s10, %s2645_s10 }
  0x32   :  { %p2652_p9 = por %p2651_p8, %p2650_p7 }
  0x34   :  { %p2653_p10 = pnand %p2652_p9, %p2646_p6 }
  0x36   :  { %2656 = shalt.err (!%p2653_p10)
}
  0x37   :  { %81 = dma.hbm_to_vmem [thread:$0]  %s3207_s5, 512, %s76_s30, [#allocation10], %s2729_s14, %s2729_s14, %s2730_s15  }
  0x38   :  { %2717 = dma.done.wait [#allocation4], 256  }
  0x39   :  { %2718 = vsyncadd [#allocation4], 4294967040 }
  0x3a   :  { %2719 = dma.done.wait [#allocation7], 1024  }
  0x3b   :  { %2720 = vsyncadd [#allocation7], 4294966272 }
  0x3c   :  { %2721 = dma.done.wait [#allocation10], 1024  }
  0x3d   :  { %2722 = vsyncadd [#allocation10], 4294966272  ;;  %v2734_v0 = vmov 0.0   ;;  %vm2735_vm0 = vmmov 0   ;;  %v102_v1 = vld [vmem:[#allocation6 + $0x18] sm:$0xff]  ;;  %v101_v2 = vld [vmem:[#allocation6 + $0x10] sm:$0xff] }
  0x3e   :  { %2226 = vmatprep.subr.mxu1 %v2734_v0  ;;  %2234 = vmatprep.mubr.msk.f32.mxu1 %vm2735_vm0, %v2734_v0  ;;  %v2826_v3 = vld [vmem:[#allocation8 + $0x18] sm:$0xff]  ;;  %v2829_v4 = vld [vmem:[#allocation8 + $0x10] sm:$0xff]  ;;  %v100_v5 = vld [vmem:[#allocation6 + $0x8] sm:$0xff]  ;;  %vm116_vm1 = vcmask 261120   ;;  %s2736_s12 = smov 64   ;;  %vm300_vm2 = vcmask 254976  }
  0x3f   :  { %2215 = vmatprep.subr.mxu0 %v102_v1  ;;  %2227 = vmatpush3.msra.mxu1 %v2826_v3  ;;  %v108_v6 = vld [vmem:[#allocation3] sm:$0xff]  ;;  %v2833_v7 = vld [vmem:[#allocation8 + $0x8] sm:$0xff]  ;;  %v99_v8 = vld [vmem:[#allocation6] sm:$0xff]  ;;  %vm409_vm3 = vcmask 257026   ;;  %vm633_vm4 = vcmask 261126   ;;  %vm521_vm5 = vcmask 259076  }
  0x40   :  { %2216 = vmatpush3.msra.mxu0 %v102_v1  ;;  %2228 = vmatprep.subr.mxu1 %v2734_v0  ;;  %v2837_v9 = vld [vmem:[#allocation8] sm:$0xff]  ;;  %v109_v10 = vld [vmem:[#allocation3 + $0x8] sm:$0xff]  ;;  %s2739_s17 = smov [#allocation13]   ;;  %s2740_s19 = smov [#allocation15]  }
  0x41   :  { %2217 = vmatprep.subr.mxu0 %v101_v2  ;;  %2229 = vmatpush3.msra.mxu1 %v2829_v4  ;;  %v2103_v11 = vld [vmem:[%s3205_s3] ss:$0 sm:$0xff]  ;;  %s2737_s3 = smov 32   ;;  %s2070_s18 = sshll.u32 %s2739_s17, 4  ;;  %s2071_s18 = int_to_ptr.vmem [resolvable:$true] %s2070_s18 }
  0x42   :  { %2218 = vmatpush3.msra.mxu0 %v101_v2  ;;  %2230 = vmatprep.subr.mxu1 %v2734_v0  ;;  %s2082_s20 = sshll.u32 %s2740_s19, 4  ;;  %s2741_s21 = smov [#allocation12]   ;;  %s2083_s20 = int_to_ptr.vmem [resolvable:$true] %s2082_s20 }
  0x43   :  { %2219 = vmatprep.subr.mxu0 %v100_v5  ;;  %2223 = vmatprep.mubr.msk.f32.mxu0 %vm116_vm1, %v108_v6  ;;  %s2058_s22 = sshll.u32 %s2741_s21, 4  ;;  %s2657_s23 = scalar_lea.vmem %s2071_s18, 64  ;;  %s3178_s22 = int_to_ptr.vmem [resolvable:$true] %s2058_s22 }
  0x44   :  { %2220 = vmatpush3.msra.mxu0 %v100_v5  ;;  %2231 = vmatpush3.msra.mxu1 %v2833_v7  ;;  %p2658_p11 = scmp.ne.s32.totalorder %s2071_s18, %s2657_s23  ;;  %p2662_p12 = scmp.lt.s32.totalorder %s2071_s18, %s2071_s18 }
  0x45   :  { %2221 = vmatprep.subr.mxu0 %v99_v8  ;;  %2232 = vmatprep.subr.mxu1 %v2734_v0  ;;  %p2663_p13 = scmp.lt.s32.totalorder %s2657_s23, %s2657_s23 }
  0x46   :  { %2222 = vmatpush3.msra.mxu0 %v99_v8  ;;  %2233 = vmatpush3.msra.mxu1 %v2837_v9 }
  0x47   :  { %2224 = vmatmul.mubr.msk.f32.vlgmr.msra.gmra.mxu0 %vm116_vm1, %v109_v10  ;;  %2235 = vmatmul.mubr.f32.vlgmr.msra.gmra.mxu1 %v2734_v0  ;;  %p2664_p0 = por %p2663_p13, %p2662_p12 }
  0x48   :  { %2237 = vmatprep.subr.mxu0 %v2734_v0  ;;  %2245 = vmatprep.mubr.msk.f32.mxu0 %vm2735_vm0, %v2734_v0 }
  0x49   :  { %2238 = vmatpush3.msra.mxu0 %v2826_v3  ;;  %2248 = vmatprep.subr.mxu1 %v2734_v0  ;;  %p2665_p1 = pnand %p2664_p0, %p2658_p11 }
  0x4a   :  { %2239 = vmatprep.subr.mxu0 %v2734_v0  ;;  %2249 = vmatpush3.msra.mxu1 %v2826_v3 }
  0x4b   :  { %2240 = vmatpush3.msra.mxu0 %v2829_v4  ;;  %2250 = vmatprep.subr.mxu1 %v2734_v0 }
  0x4c   :  { %2241 = vmatprep.subr.mxu0 %v2734_v0  ;;  %2251 = vmatpush3.msra.mxu1 %v2829_v4 }
  0x4d   :  { %2242 = vmatpush3.msra.mxu0 %v2833_v7  ;;  %2252 = vmatprep.subr.mxu1 %v2734_v0 }
  0x4e   :  { %2243 = vmatprep.subr.mxu0 %v2734_v0  ;;  %2253 = vmatpush3.msra.mxu1 %v2833_v7 }
  0x4f   :  { %2244 = vmatpush3.msra.mxu0 %v2837_v9  ;;  %2254 = vmatprep.subr.mxu1 %v2734_v0 }
  0x50   :  { %2255 = vmatpush3.msra.mxu1 %v2837_v9  ;;  %2256 = vmatprep.mubr.msk.f32.mxu1 %vm2735_vm0, %v2734_v0 }
  0x51   :  { %2259 = vmatprep.subr.mxu0 %v2734_v0  ;;  %2270 = vmatprep.subr.mxu1 %v2734_v0 }
 0x107   :  { %v2225_v12 = vpop.f32.mrf.mxu0  ;;  %v267_v13 = vpop.f32.mrf.mxu1 }
 0x108   :  { %v2869_v14 = vadd.f32 %v2225_v12, %v2103_v11 }
 0x109   :  { %v189_v15 = vpop.f32.mrf.mxu0  ;;  %v2236_v16 = vpop.f32.mrf.mxu1 }
 0x10a   :  { %v2871_v17 = vadd.f32 %v2103_v11, %v189_v15 }
 0x10c   :  { %v271_v18 = vadd.f32 %v267_v13, %v2871_v17 }
 0x10e   :  { %2429 = vtanh.f32 %v271_v18  ;;  %v272_v20 = vsub.f32 0.0, %v271_v18 }
 0x110   :  { %v273_v21 = vmul.f32 1.442695, %v272_v20 }
 0x112   :  { %2431 = vpow2.f32 %v273_v21 }
 0x11b   :  { %v2430_v19 = vpop.eup %2429 }
 0x11c   :  { %281 = vrot.lane.b32.xlu0 %v2430_v19, %s2736_s12 }
 0x11f   :  { %v2432_v22 = vpop.eup %2431 }
 0x120   :  { %v275_v23 = vadd.f32 1.0, %v2432_v22 }
 0x122   :  { %2433 = vrcp.f32 %v275_v23 }
 0x12f   :  { %v2434_v24 = vpop.eup %2433 }
 0x130   :  { %v279_v27 = vmul.f32 0.0, %v2434_v24 }
 0x18e   :  { %v282_v25 = vpop.permute.xlu0 %281 }
 0x18f   :  { %v284_v26 = vmul.f32 %v2434_v24, %v282_v25 }
 0x191   :  { %286 = vrot.lane.b32.xlu0 %v284_v26, %s2737_s3 }
 0x203   :  { %v287_v28 = vpop.permute.xlu0 %286 }
 0x204   :  { %v289_v29 = vadd.f32 %v287_v28, %v279_v27 }
 0x206   :  { %2435 = vtanh.f32 %v289_v29  ;;  %v386_v46 = vrot.slane %v289_v29, 6 }
 0x213   :  { %v2436_v30 = vpop.eup %2435 }
 0x214   :  { %292 = vrot.lane.b32.xlu1 %v2436_v30, %s2736_s12 }
 0x286   :  { %v293_v31 = vpop.permute.xlu1 %292 }
 0x287   :  { %v295_v32 = vmul.f32 %v2434_v24, %v293_v31 }
 0x289   :  { %297 = vrot.lane.b32.xlu1 %v295_v32, %s2737_s3 }
 0x2fb   :  { %v298_v33 = vpop.permute.xlu1 %297 }
 0x2fc   :  { %301 = vst.msk [vmem:[#allocation2] sm:$0x3] %vm300_vm2, %v298_v33  ;;  %2246 = vmatmul.mubr.msk.f32.vlgmr.msra.gmra.mxu0 %vm116_vm1, %v298_v33 }
 0x2fd   :  { %2260 = vmatpush3.msra.mxu0 %v2826_v3  ;;  %2267 = vmatprep.mubr.msk.f32.mxu0 %vm2735_vm0, %v2734_v0 }
 0x2fe   :  { %2261 = vmatprep.subr.mxu0 %v2734_v0 }
 0x2ff   :  { %2262 = vmatpush3.msra.mxu0 %v2829_v4 }
 0x300   :  { %2263 = vmatprep.subr.mxu0 %v2734_v0 }
 0x301   :  { %2264 = vmatpush3.msra.mxu0 %v2833_v7 }
 0x302   :  { %2265 = vmatprep.subr.mxu0 %v2734_v0 }
 0x303   :  { %2266 = vmatpush3.msra.mxu0 %v2837_v9 }
 0x304   :  { %2281 = vmatprep.subr.mxu0 %v2734_v0 }
 0x3bc   :  { %v370_v34 = vpop.f32.mrf.mxu0 }
 0x3bd   :  { %v375_v35 = vrot.slane %v370_v34, 6 }
 0x3be   :  { %v2247_v36 = vpop.f32.mrf.mxu0 }
 0x3bf   :  { %v377_v37 = vadd.f32 %v375_v35, %v2871_v17 }
 0x3c1   :  { %2437 = vtanh.f32 %v377_v37  ;;  %v378_v39 = vsub.f32 0.0, %v377_v37 }
 0x3c3   :  { %v379_v40 = vmul.f32 1.442695, %v378_v39 }
 0x3c5   :  { %2439 = vpow2.f32 %v379_v40 }
 0x3ce   :  { %v2438_v38 = vpop.eup %2437 }
 0x3cf   :  { %390 = vrot.lane.b32.xlu0 %v2438_v38, %s2736_s12 }
 0x3d2   :  { %v2440_v41 = vpop.eup %2439 }
 0x3d3   :  { %v381_v42 = vadd.f32 1.0, %v2440_v41 }
 0x3d5   :  { %2441 = vrcp.f32 %v381_v42 }
 0x3e2   :  { %v2442_v43 = vpop.eup %2441 }
 0x3e3   :  { %v388_v47 = vmul.f32 %v2442_v43, %v386_v46 }
 0x441   :  { %v391_v44 = vpop.permute.xlu0 %390 }
 0x442   :  { %v393_v45 = vmul.f32 %v2442_v43, %v391_v44 }
 0x444   :  { %395 = vrot.lane.b32.xlu1 %v393_v45, %s2737_s3 }
 0x4b6   :  { %v396_v48 = vpop.permute.xlu1 %395 }
 0x4b7   :  { %v398_v49 = vadd.f32 %v396_v48, %v388_v47 }
 0x4b9   :  { %2443 = vtanh.f32 %v398_v49  ;;  %v498_v6 = vrot.slane %v398_v49, 6 }
 0x4c6   :  { %v2444_v50 = vpop.eup %2443 }
 0x4c7   :  { %401 = vrot.lane.b32.xlu0 %v2444_v50, %s2736_s12 }
 0x539   :  { %v402_v51 = vpop.permute.xlu0 %401 }
 0x53a   :  { %v2894_v52 = vmul.f32 %v2442_v43, %v402_v51 }
 0x53c   :  { %v411_v53 = vrot.slane %v2894_v52, 2 }
 0x53e   :  { %412 = vrot.lane.b32.xlu1 %v411_v53, %s2737_s3 }
 0x5b0   :  { %v413_v54 = vpop.permute.xlu1 %412 }
 0x5b1   :  { %2257 = vmatmul.mubr.msk.f32.vlgmr.msra.gmra.mxu1 %vm116_vm1, %v413_v54 }
 0x5b2   :  { %2271 = vmatpush3.msra.mxu1 %v2826_v3  ;;  %2278 = vmatprep.mubr.msk.f32.mxu1 %vm2735_vm0, %v2734_v0 }
 0x5b3   :  { %2272 = vmatprep.subr.mxu1 %v2734_v0 }
 0x5b4   :  { %2273 = vmatpush3.msra.mxu1 %v2829_v4 }
 0x5b5   :  { %2274 = vmatprep.subr.mxu1 %v2734_v0 }
 0x5b6   :  { %2275 = vmatpush3.msra.mxu1 %v2833_v7 }
 0x5b7   :  { %2276 = vmatprep.subr.mxu1 %v2734_v0 }
 0x5b8   :  { %2277 = vmatpush3.msra.mxu1 %v2837_v9 }
 0x5b9   :  { %2292 = vmatprep.subr.mxu1 %v2734_v0 }
 0x671   :  { %v482_v55 = vpop.f32.mrf.mxu1 }
 0x672   :  { %v487_v56 = vrot.slane %v482_v55, 4 }
 0x673   :  { %v2258_v57 = vpop.f32.mrf.mxu1 }
 0x674   :  { %v489_v58 = vadd.f32 %v487_v56, %v2871_v17 }
 0x676   :  { %2445 = vtanh.f32 %v489_v58  ;;  %v490_v60 = vsub.f32 0.0, %v489_v58 }
 0x678   :  { %v491_v61 = vmul.f32 1.442695, %v490_v60 }
 0x67a   :  { %2447 = vpow2.f32 %v491_v61 }
 0x683   :  { %v2446_v59 = vpop.eup %2445 }
 0x684   :  { %502 = vrot.lane.b32.xlu0 %v2446_v59, %s2736_s12 }
 0x687   :  { %v2448_v62 = vpop.eup %2447 }
 0x688   :  { %v493_v63 = vadd.f32 1.0, %v2448_v62 }
 0x68a   :  { %2449 = vrcp.f32 %v493_v63 }
 0x697   :  { %v2450_v1 = vpop.eup %2449 }
 0x698   :  { %v500_v8 = vmul.f32 %v2450_v1, %v498_v6 }
 0x6f6   :  { %v503_v2 = vpop.permute.xlu0 %502 }
 0x6f7   :  { %v505_v5 = vmul.f32 %v2450_v1, %v503_v2 }
 0x6f9   :  { %507 = vrot.lane.b32.xlu1 %v505_v5, %s2737_s3 }
 0x76b   :  { %v508_v10 = vpop.permute.xlu1 %507 }
 0x76c   :  { %v510_v11 = vadd.f32 %v508_v10, %v500_v8 }
 0x76e   :  { %2451 = vtanh.f32 %v510_v11  ;;  %v610_v31 = vrot.slane %v510_v11, 6 }
 0x77b   :  { %v2452_v12 = vpop.eup %2451 }
 0x77c   :  { %513 = vrot.lane.b32.xlu0 %v2452_v12, %s2736_s12 }
 0x7ee   :  { %v514_v13 = vpop.permute.xlu0 %513 }
 0x7ef   :  { %v2913_v15 = vmul.f32 %v2450_v1, %v514_v13 }
 0x7f1   :  { %v523_v16 = vrot.slane %v2913_v15, 4 }
 0x7f3   :  { %524 = vrot.lane.b32.xlu1 %v523_v16, %s2737_s3 }
 0x865   :  { %v525_v18 = vpop.permute.xlu1 %524 }
 0x866   :  { %2268 = vmatmul.mubr.msk.f32.vlgmr.msra.gmra.mxu0 %vm116_vm1, %v525_v18 }
 0x867   :  { %2282 = vmatpush3.msra.mxu0 %v2826_v3  ;;  %2289 = vmatprep.mubr.msk.f32.mxu0 %vm2735_vm0, %v2734_v0 }
 0x868   :  { %2283 = vmatprep.subr.mxu0 %v2734_v0 }
 0x869   :  { %2284 = vmatpush3.msra.mxu0 %v2829_v4 }
 0x86a   :  { %2285 = vmatprep.subr.mxu0 %v2734_v0 }
 0x86b   :  { %2286 = vmatpush3.msra.mxu0 %v2833_v7 }
 0x86c   :  { %2287 = vmatprep.subr.mxu0 %v2734_v0 }
 0x86d   :  { %2288 = vmatpush3.msra.mxu0 %v2837_v9 }
 0x86e   :  { %2303 = vmatprep.subr.mxu0 %v2734_v0 }
 0x926   :  { %v594_v19 = vpop.f32.mrf.mxu0 }
 0x927   :  { %v599_v20 = vrot.slane %v594_v19, 2 }
 0x928   :  { %v2269_v21 = vpop.f32.mrf.mxu0 }
 0x929   :  { %v601_v22 = vadd.f32 %v599_v20, %v2871_v17 }
 0x92b   :  { %2453 = vtanh.f32 %v601_v22  ;;  %v602_v24 = vsub.f32 0.0, %v601_v22 }
 0x92d   :  { %v603_v25 = vmul.f32 1.442695, %v602_v24 }
 0x92f   :  { %2455 = vpow2.f32 %v603_v25 }
 0x938   :  { %v2454_v23 = vpop.eup %2453 }
 0x939   :  { %614 = vrot.lane.b32.xlu0 %v2454_v23, %s2736_s12 }
 0x93c   :  { %v2456_v26 = vpop.eup %2455 }
 0x93d   :  { %v605_v27 = vadd.f32 1.0, %v2456_v26 }
 0x93f   :  { %2457 = vrcp.f32 %v605_v27 }
 0x94c   :  { %v2458_v28 = vpop.eup %2457 }
 0x94d   :  { %v612_v32 = vmul.f32 %v2458_v28, %v610_v31 }
 0x9ab   :  { %v615_v29 = vpop.permute.xlu0 %614 }
 0x9ac   :  { %v617_v30 = vmul.f32 %v2458_v28, %v615_v29 }
 0x9ae   :  { %619 = vrot.lane.b32.xlu1 %v617_v30, %s2737_s3 }
 0xa20   :  { %v620_v33 = vpop.permute.xlu1 %619 }
 0xa21   :  { %v622_v34 = vadd.f32 %v620_v33, %v612_v32 }
 0xa23   :  { %2459 = vtanh.f32 %v622_v34  ;;  %v719_v50 = vrot.slane %v622_v34, 6 }
 0xa30   :  { %v2460_v17 = vpop.eup %2459 }
 0xa31   :  { %625 = vrot.lane.b32.xlu0 %v2460_v17, %s2736_s12 }
 0xaa3   :  { %v626_v35 = vpop.permute.xlu0 %625 }
 0xaa4   :  { %v2932_v36 = vmul.f32 %v2458_v28, %v626_v35 }
 0xaa6   :  { %v635_v37 = vrot.slane %v2932_v36, 6 }
 0xaa8   :  { %636 = vrot.lane.b32.xlu1 %v635_v37, %s2737_s3 }
 0xb1a   :  { %v637_v38 = vpop.permute.xlu1 %636 }
 0xb1b   :  { %2279 = vmatmul.mubr.msk.f32.vlgmr.msra.gmra.mxu1 %vm116_vm1, %v637_v38 }
 0xb1c   :  { %2293 = vmatpush3.msra.mxu1 %v2826_v3  ;;  %2300 = vmatprep.mubr.msk.f32.mxu1 %vm2735_vm0, %v2734_v0 }
 0xb1d   :  { %2294 = vmatprep.subr.mxu1 %v2734_v0 }
 0xb1e   :  { %2295 = vmatpush3.msra.mxu1 %v2829_v4 }
 0xb1f   :  { %2296 = vmatprep.subr.mxu1 %v2734_v0 }
 0xb20   :  { %2297 = vmatpush3.msra.mxu1 %v2833_v7 }
 0xb21   :  { %2298 = vmatprep.subr.mxu1 %v2734_v0 }
 0xb22   :  { %2299 = vmatpush3.msra.mxu1 %v2837_v9 }
 0xbdb   :  { %v706_v39 = vpop.f32.mrf.mxu1 }
 0xbdc   :  { %v710_v40 = vadd.f32 %v706_v39, %v2869_v14 }
 0xbdd   :  { %v2280_v41 = vpop.f32.mrf.mxu1 }
 0xbde   :  { %2461 = vtanh.f32 %v710_v40  ;;  %v711_v43 = vsub.f32 0.0, %v710_v40 }
 0xbe0   :  { %v712_v44 = vmul.f32 1.442695, %v711_v43 }
 0xbe2   :  { %2463 = vpow2.f32 %v712_v44 }
 0xbeb   :  { %v2462_v42 = vpop.eup %2461 }
 0xbec   :  { %723 = vrot.lane.b32.xlu0 %v2462_v42, %s2736_s12 }
 0xbef   :  { %v2464_v45 = vpop.eup %2463 }
 0xbf0   :  { %v714_v46 = vadd.f32 1.0, %v2464_v45 }
 0xbf2   :  { %2465 = vrcp.f32 %v714_v46 }
 0xbff   :  { %v2466_v47 = vpop.eup %2465 }
 0xc00   :  { %v721_v51 = vmul.f32 %v2466_v47, %v719_v50 }
 0xc5e   :  { %v724_v48 = vpop.permute.xlu0 %723 }
 0xc5f   :  { %v726_v49 = vmul.f32 %v2466_v47, %v724_v48 }
 0xc61   :  { %728 = vrot.lane.b32.xlu1 %v726_v49, %s2737_s3 }
 0xcd3   :  { %v729_v53 = vpop.permute.xlu1 %728 }
 0xcd4   :  { %v731_v54 = vadd.f32 %v729_v53, %v721_v51 }
 0xcd6   :  { %2467 = vtanh.f32 %v731_v54  ;;  %v827_v6 = vrot.slane %v731_v54, 6 }
 0xce3   :  { %v2468_v55 = vpop.eup %2467 }
 0xce4   :  { %734 = vrot.lane.b32.xlu0 %v2468_v55, %s2736_s12 }
 0xd56   :  { %v735_v56 = vpop.permute.xlu0 %734 }
 0xd57   :  { %v737_v57 = vmul.f32 %v2466_v47, %v735_v56 }
 0xd59   :  { %739 = vrot.lane.b32.xlu1 %v737_v57, %s2737_s3 }
 0xdcb   :  { %v740_v58 = vpop.permute.xlu1 %739 }
 0xdcc   :  { %742 = vst.msk [vmem:[#allocation2 + $0x8] sm:$0x3] %vm300_vm2, %v740_v58  ;;  %2290 = vmatmul.mubr.msk.f32.vlgmr.msra.gmra.mxu0 %vm116_vm1, %v740_v58 }
 0xdcd   :  { %2304 = vmatpush3.msra.mxu0 %v2826_v3  ;;  %2311 = vmatprep.mubr.msk.f32.mxu0 %vm2735_vm0, %v2734_v0 }
 0xdce   :  { %2305 = vmatprep.subr.mxu0 %v2734_v0 }
 0xdcf   :  { %2306 = vmatpush3.msra.mxu0 %v2829_v4 }
 0xdd0   :  { %2307 = vmatprep.subr.mxu0 %v2734_v0 }
 0xdd1   :  { %2308 = vmatpush3.msra.mxu0 %v2833_v7 }
 0xdd2   :  { %2309 = vmatprep.subr.mxu0 %v2734_v0 }
 0xdd3   :  { %2310 = vmatpush3.msra.mxu0 %v2837_v9 }
 0xdd4   :  { %2325 = vmatprep.subr.mxu0 %v2734_v0 }
 0xe8c   :  { %v811_v59 = vpop.f32.mrf.mxu0 }
 0xe8d   :  { %v816_v60 = vrot.slane %v811_v59, 6  ;;  %v1082_v59 = vld [vmem:[#allocation9 + $0x18] sm:$0xff] }
 0xe8e   :  { %v2291_v3 = vpop.f32.mrf.mxu0  ;;  %2314 = vmatprep.subr.mxu1 %v1082_v59 }
 0xe8f   :  { %v818_v61 = vadd.f32 %v816_v60, %v2869_v14  ;;  %v1081_v60 = vld [vmem:[#allocation9 + $0x10] sm:$0xff]  ;;  %v2999_v3 = vld [vmem:[#allocation11 + $0x18] sm:$0xff] }
 0xe91   :  { %2469 = vtanh.f32 %v818_v61  ;;  %v819_v4 = vsub.f32 0.0, %v818_v61  ;;  %v1080_v61 = vld [vmem:[#allocation9 + $0x8] sm:$0xff] }
 0xe93   :  { %v820_v63 = vmul.f32 1.442695, %v819_v4  ;;  %v3005_v4 = vld [vmem:[#allocation11 + $0x8] sm:$0xff] }
 0xe95   :  { %2471 = vpow2.f32 %v820_v63  ;;  %v3011_v63 = vld [vmem:[#allocation11] sm:$0xff] }
 0xe9e   :  { %v2470_v62 = vpop.eup %2469 }
 0xe9f   :  { %831 = vrot.lane.b32.xlu0 %v2470_v62, %s2736_s12  ;;  %v3002_v62 = vld [vmem:[#allocation11 + $0x10] sm:$0xff] }
 0xea2   :  { %v2472_v1 = vpop.eup %2471 }
 0xea3   :  { %v822_v7 = vadd.f32 1.0, %v2472_v1 }
 0xea5   :  { %2473 = vrcp.f32 %v822_v7 }
 0xeb2   :  { %v2474_v2 = vpop.eup %2473 }
 0xeb3   :  { %v829_v8 = vmul.f32 %v2474_v2, %v827_v6 }
 0xf11   :  { %v832_v5 = vpop.permute.xlu0 %831 }
 0xf12   :  { %v834_v9 = vmul.f32 %v2474_v2, %v832_v5 }
 0xf14   :  { %836 = vrot.lane.b32.xlu1 %v834_v9, %s2737_s3 }
 0xf86   :  { %v837_v10 = vpop.permute.xlu1 %836 }
 0xf87   :  { %v839_v11 = vadd.f32 %v837_v10, %v829_v8 }
 0xf89   :  { %2475 = vtanh.f32 %v839_v11  ;;  %v938_v32 = vrot.slane %v839_v11, 6 }
 0xf96   :  { %v2476_v12 = vpop.eup %2475 }
 0xf97   :  { %842 = vrot.lane.b32.xlu0 %v2476_v12, %s2736_s12  ;;  %v2113_v12 = vld [vmem:[%s3208_s6] ss:$0 sm:$0xff]  ;;  %s2738_s6 = smov 96  }
0x1009   :  { %v843_v13 = vpop.permute.xlu0 %842 }
0x100a   :  { %v2967_v16 = vmul.f32 %v2474_v2, %v843_v13 }
0x100c   :  { %v851_v18 = vrot.slane %v2967_v16, 2 }
0x100e   :  { %852 = vrot.lane.b32.xlu1 %v851_v18, %s2737_s3 }
0x1080   :  { %v853_v19 = vpop.permute.xlu1 %852 }
0x1081   :  { %2301 = vmatmul.mubr.msk.f32.vlgmr.msra.gmra.mxu1 %vm116_vm1, %v853_v19 }
0x1082   :  { %2315 = vmatpush3.msra.mxu1 %v1082_v59 }
0x1083   :  { %2316 = vmatprep.subr.mxu1 %v1081_v60 }
0x1084   :  { %2317 = vmatpush3.msra.mxu1 %v1081_v60 }
0x1085   :  { %2318 = vmatprep.subr.mxu1 %v1080_v61 }
0x1086   :  { %2319 = vmatpush3.msra.mxu1 %v1080_v61 }
0x1141   :  { %v922_v20 = vpop.f32.mrf.mxu1 }
0x1142   :  { %v927_v21 = vrot.slane %v922_v20, 4 }
0x1143   :  { %v2302_v22 = vpop.f32.mrf.mxu1 }
0x1144   :  { %v929_v23 = vadd.f32 %v927_v21, %v2869_v14 }
0x1146   :  { %2477 = vtanh.f32 %v929_v23  ;;  %v930_v25 = vsub.f32 0.0, %v929_v23 }
0x1148   :  { %v931_v26 = vmul.f32 1.442695, %v930_v25 }
0x114a   :  { %2479 = vpow2.f32 %v931_v26 }
0x1153   :  { %v2478_v24 = vpop.eup %2477 }
0x1154   :  { %942 = vrot.lane.b32.xlu0 %v2478_v24, %s2736_s12 }
0x1157   :  { %v2480_v27 = vpop.eup %2479 }
0x1158   :  { %v933_v28 = vadd.f32 1.0, %v2480_v27 }
0x115a   :  { %2481 = vrcp.f32 %v933_v28 }
0x1167   :  { %v2482_v29 = vpop.eup %2481 }
0x1168   :  { %v940_v33 = vmul.f32 %v2482_v29, %v938_v32 }
0x11c6   :  { %v943_v30 = vpop.permute.xlu0 %942 }
0x11c7   :  { %v945_v31 = vmul.f32 %v2482_v29, %v943_v30 }
0x11c9   :  { %947 = vrot.lane.b32.xlu1 %v945_v31, %s2737_s3 }
0x123b   :  { %v948_v34 = vpop.permute.xlu1 %947 }
0x123c   :  { %v950_v17 = vadd.f32 %v948_v34, %v940_v33 }
0x123e   :  { %2483 = vtanh.f32 %v950_v17 }
0x124b   :  { %v2484_v35 = vpop.eup %2483 }
0x124c   :  { %953 = vrot.lane.b32.xlu0 %v2484_v35, %s2736_s12 }
0x12be   :  { %v954_v37 = vpop.permute.xlu0 %953 }
0x12bf   :  { %v956_v38 = vmul.f32 %v2482_v29, %v954_v37 }
0x12c1   :  { %v962_v39 = vrot.slane %v956_v38, 4 }
0x12c3   :  { %963 = vrot.lane.b32.xlu1 %v962_v39, %s2737_s3 }
0x1335   :  { %v964_v40 = vpop.permute.xlu1 %963 }
0x1336   :  { %2312 = vmatmul.mubr.msk.f32.vlgmr.msra.gmra.mxu0 %vm116_vm1, %v964_v40 }
0x1337   :  { %2333 = vmatprep.mubr.msk.f32.mxu0 %vm2735_vm0, %v2734_v0  ;;  %2326 = vmatpush3.msra.mxu0 %v2999_v3 }
0x1338   :  { %2327 = vmatprep.subr.mxu0 %v2734_v0 }
0x1339   :  { %2328 = vmatpush3.msra.mxu0 %v3002_v62 }
0x133a   :  { %2329 = vmatprep.subr.mxu0 %v2734_v0 }
0x133b   :  { %2330 = vmatpush3.msra.mxu0 %v3005_v4 }
0x133c   :  { %2331 = vmatprep.subr.mxu0 %v2734_v0 }
0x133d   :  { %2332 = vmatpush3.msra.mxu0 %v3011_v63 }
0x133e   :  { %2334 = vmatmul.mubr.f32.vlgmr.msra.gmra.mxu0 %v2734_v0  ;;  %2347 = vmatprep.subr.mxu0 %v2734_v0 }
0x133f   :  { %2348 = vmatpush3.msra.mxu0 %v2999_v3  ;;  %2355 = vmatprep.mubr.msk.f32.mxu0 %vm2735_vm0, %v2734_v0 }
0x1340   :  { %2349 = vmatprep.subr.mxu0 %v2734_v0 }
0x1341   :  { %2350 = vmatpush3.msra.mxu0 %v3002_v62 }
0x1342   :  { %2351 = vmatprep.subr.mxu0 %v2734_v0 }
0x1343   :  { %2352 = vmatpush3.msra.mxu0 %v3005_v4 }
0x1344   :  { %2353 = vmatprep.subr.mxu0 %v2734_v0 }
0x1345   :  { %2354 = vmatpush3.msra.mxu0 %v3011_v63 }
0x1346   :  { %2369 = vmatprep.subr.mxu0 %v2734_v0 }
0x13f6   :  { %v1033_v41 = vpop.f32.mrf.mxu0 }
0x13f7   :  { %v1038_v42 = vrot.slane %v1033_v41, 2 }
0x13f8   :  { %v2313_v43 = vpop.f32.mrf.mxu0 }
0x13f9   :  { %v1040_v44 = vadd.f32 %v1038_v42, %v2869_v14  ;;  %v1049_v14 = vrot.slane %v950_v17, 6 }
0x13fb   :  { %2485 = vtanh.f32 %v1040_v44  ;;  %v1041_v46 = vsub.f32 0.0, %v1040_v44 }
0x13fd   :  { %v1042_v47 = vmul.f32 1.442695, %v1041_v46 }
0x13fe   :  { %v1243_v10 = vpop.f32.mrf.mxu0 }
0x13ff   :  { %2487 = vpow2.f32 %v1042_v47 }
0x1400   :  { %v2335_v11 = vpop.f32.mrf.mxu0 }
0x1408   :  { %v2486_v45 = vpop.eup %2485 }
0x1409   :  { %1053 = vrot.lane.b32.xlu0 %v2486_v45, %s2736_s12 }
0x140c   :  { %v2488_v48 = vpop.eup %2487 }
0x140d   :  { %v1044_v49 = vadd.f32 1.0, %v2488_v48 }
0x140f   :  { %2489 = vrcp.f32 %v1044_v49 }
0x141c   :  { %v2490_v50 = vpop.eup %2489 }
0x141d   :  { %v1051_v54 = vmul.f32 %v2490_v50, %v1049_v14 }
0x147b   :  { %v1054_v51 = vpop.permute.xlu0 %1053 }
0x147c   :  { %v1056_v53 = vmul.f32 %v2490_v50, %v1054_v51 }
0x147e   :  { %1058 = vrot.lane.b32.xlu1 %v1056_v53, %s2737_s3 }
0x1482   :  { %406 = vrot.lane.b32.xlu1 %v2894_v52, %s2737_s3 }
0x1486   :  { %630 = vrot.lane.b32.xlu1 %v2932_v36, %s2737_s3 }
0x148a   :  { %958 = vrot.lane.b32.xlu1 %v956_v38, %s2737_s3 }
0x14f0   :  { %v1059_v55 = vpop.permute.xlu1 %1058 }
0x14f1   :  { %v2988_v56 = vadd.f32 %v1059_v55, %v1051_v54 }
0x14f3   :  { %2491 = vtanh.f32 %v2988_v56 }
0x14f4   :  { %v407_v57 = vpop.permute.xlu1 %406 }
0x14f5   :  { %410 = vst.msk [vmem:[#allocation2] sm:$0xc] %vm409_vm3, %v407_v57 }
0x14f8   :  { %v631_v58 = vpop.permute.xlu1 %630 }
0x14f9   :  { %634 = vst.msk [vmem:[#allocation2] sm:$0xc0] %vm633_vm4, %v631_v58 }
0x14fc   :  { %v959_v52 = vpop.permute.xlu1 %958 }
0x14fd   :  { %961 = vst.msk [vmem:[#allocation2 + $0x8] sm:$0x30] %vm521_vm5, %v959_v52 }
0x1500   :  { %v2492_v36 = vpop.eup %2491 }
0x1501   :  { %1064 = vrot.lane.b32.xlu0 %v2492_v36, %s2736_s12 }
0x1505   :  { %518 = vrot.lane.b32.xlu0 %v2913_v15, %s2737_s3  ;;  %v1079_v15 = vld [vmem:[#allocation9] sm:$0xff] }
0x1506   :  { %2320 = vmatprep.subr.mxu1 %v1079_v15 }
0x1507   :  { %2321 = vmatpush3.msra.mxu1 %v1079_v15 }
0x1508   :  { %2336 = vmatprep.subr.mxu1 %v2734_v0 }
0x1509   :  { %847 = vrot.lane.b32.xlu0 %v2967_v16, %s2737_s3 }
0x1573   :  { %v1065_v1 = vpop.permute.xlu0 %1064 }
0x1574   :  { %v1067_v7 = vmul.f32 %v2490_v50, %v1065_v1 }
0x1576   :  { %1069 = vrot.lane.b32.xlu0 %v1067_v7, %s2737_s3 }
0x1577   :  { %v519_v2 = vpop.permute.xlu0 %518 }
0x1578   :  { %522 = vst.msk [vmem:[#allocation2] sm:$0x30] %vm521_vm5, %v519_v2 }
0x157b   :  { %v848_v5 = vpop.permute.xlu0 %847 }
0x157c   :  { %850 = vst.msk [vmem:[#allocation2 + $0x8] sm:$0xc] %vm409_vm3, %v848_v5 }
0x157f   :  { %v1088_v9 = vld [vmem:[#allocation2] sm:$0xff] }
0x1580   :  { %2322 = vmatprep.mubr.msk.f32.mxu1 %vm116_vm1, %v1088_v9 }
0x15e8   :  { %v1070_v6 = vpop.permute.xlu0 %1069 }
0x15e9   :  { %1072 = vst.msk [vmem:[#allocation2 + $0x8] sm:$0xc0] %vm633_vm4, %v1070_v6  ;;  %1073 = vst.msk [vmem:[#allocation13 - $0x6] sm:$0xc0] %vm633_vm4, %v1070_v6 }
0x15f0   :  { %v1089_v8 = vld [vmem:[#allocation2 + $0x8] sm:$0xff] }
0x15f1   :  { %2323 = vmatmul.mubr.msk.f32.vlgmr.msra.gmra.mxu1 %vm116_vm1, %v1089_v8 }
0x15f2   :  { %2337 = vmatpush3.msra.mxu1 %v2999_v3  ;;  %2344 = vmatprep.mubr.msk.f32.mxu1 %vm2735_vm0, %v2734_v0 }
0x15f3   :  { %2338 = vmatprep.subr.mxu1 %v2734_v0 }
0x15f4   :  { %2339 = vmatpush3.msra.mxu1 %v3002_v62 }
0x15f5   :  { %2340 = vmatprep.subr.mxu1 %v2734_v0 }
0x15f6   :  { %2341 = vmatpush3.msra.mxu1 %v3005_v4 }
0x15f7   :  { %2342 = vmatprep.subr.mxu1 %v2734_v0 }
0x15f8   :  { %2343 = vmatpush3.msra.mxu1 %v3011_v63 }
0x15f9   :  { %2358 = vmatprep.subr.mxu1 %v2734_v0 }
0x16b1   :  { %v2324_v13 = vpop.f32.mrf.mxu1 }
0x16b2   :  { %v3047_v16 = vadd.f32 %v2324_v13, %v2113_v12 }
0x16b3   :  { %v1168_v18 = vpop.f32.mrf.mxu1 }
0x16b4   :  { %v3049_v19 = vadd.f32 %v2113_v12, %v1168_v18 }
0x16b6   :  { %v1247_v20 = vadd.f32 %v1243_v10, %v3049_v19 }
0x16b8   :  { %2493 = vtanh.f32 %v1247_v20  ;;  %v1248_v22 = vsub.f32 0.0, %v1247_v20 }
0x16ba   :  { %v1249_v23 = vmul.f32 1.442695, %v1248_v22 }
0x16bc   :  { %2495 = vpow2.f32 %v1249_v23 }
0x16c5   :  { %v2494_v21 = vpop.eup %2493 }
0x16c6   :  { %1257 = vrot.lane.b32.xlu1 %v2494_v21, %s2736_s12 }
0x16c9   :  { %v2496_v24 = vpop.eup %2495 }
0x16ca   :  { %v1251_v25 = vadd.f32 1.0, %v2496_v24 }
0x16cc   :  { %2497 = vrcp.f32 %v1251_v25 }
0x16d9   :  { %v2498_v26 = vpop.eup %2497 }
0x16da   :  { %v1255_v29 = vmul.f32 0.0, %v2498_v26 }
0x1738   :  { %v1258_v27 = vpop.permute.xlu1 %1257 }
0x1739   :  { %v1260_v28 = vmul.f32 %v2498_v26, %v1258_v27 }
0x173b   :  { %1262 = vrot.lane.b32.xlu0 %v1260_v28, %s2737_s3 }
0x17ad   :  { %v1263_v30 = vpop.permute.xlu0 %1262 }
0x17ae   :  { %v1265_v31 = vadd.f32 %v1263_v30, %v1255_v29 }
0x17b0   :  { %2499 = vtanh.f32 %v1265_v31  ;;  %v1361_v48 = vrot.slane %v1265_v31, 6 }
0x17bd   :  { %v2500_v32 = vpop.eup %2499 }
0x17be   :  { %1268 = vrot.lane.b32.xlu1 %v2500_v32, %s2736_s12 }
0x1830   :  { %v1269_v33 = vpop.permute.xlu1 %1268 }
0x1831   :  { %v1271_v34 = vmul.f32 %v2498_v26, %v1269_v33 }
0x1833   :  { %1273 = vrot.lane.b32.xlu0 %v1271_v34, %s2737_s3 }
0x18a5   :  { %v1274_v17 = vpop.permute.xlu0 %1273 }
0x18a6   :  { %1276 = vst.msk [vmem:[#allocation12] sm:$0x3] %vm300_vm2, %v1274_v17  ;;  %2345 = vmatmul.mubr.msk.f32.vlgmr.msra.gmra.mxu1 %vm116_vm1, %v1274_v17 }
0x18a7   :  { %2359 = vmatpush3.msra.mxu1 %v2999_v3  ;;  %2366 = vmatprep.mubr.msk.f32.mxu1 %vm2735_vm0, %v2734_v0 }
0x18a8   :  { %2360 = vmatprep.subr.mxu1 %v2734_v0 }
0x18a9   :  { %2361 = vmatpush3.msra.mxu1 %v3002_v62 }
0x18aa   :  { %2362 = vmatprep.subr.mxu1 %v2734_v0 }
0x18ab   :  { %2363 = vmatpush3.msra.mxu1 %v3005_v4 }
0x18ac   :  { %2364 = vmatprep.subr.mxu1 %v2734_v0 }
0x18ad   :  { %2365 = vmatpush3.msra.mxu1 %v3011_v63 }
0x18ae   :  { %2380 = vmatprep.subr.mxu1 %v2734_v0 }
0x1966   :  { %v1345_v35 = vpop.f32.mrf.mxu1 }
0x1967   :  { %v1350_v37 = vrot.slane %v1345_v35, 6 }
0x1968   :  { %v2346_v38 = vpop.f32.mrf.mxu1 }
0x1969   :  { %v1352_v39 = vadd.f32 %v1350_v37, %v3049_v19 }
0x196b   :  { %2501 = vtanh.f32 %v1352_v39  ;;  %v1353_v41 = vsub.f32 0.0, %v1352_v39 }
0x196d   :  { %v1354_v42 = vmul.f32 1.442695, %v1353_v41 }
0x196f   :  { %2503 = vpow2.f32 %v1354_v42 }
0x1978   :  { %v2502_v40 = vpop.eup %2501 }
0x1979   :  { %1365 = vrot.lane.b32.xlu1 %v2502_v40, %s2736_s12 }
0x197c   :  { %v2504_v43 = vpop.eup %2503 }
0x197d   :  { %v1356_v44 = vadd.f32 1.0, %v2504_v43 }
0x197f   :  { %2505 = vrcp.f32 %v1356_v44 }
0x198c   :  { %v2506_v45 = vpop.eup %2505 }
0x198d   :  { %v1363_v49 = vmul.f32 %v2506_v45, %v1361_v48 }
0x19eb   :  { %v1366_v46 = vpop.permute.xlu1 %1365 }
0x19ec   :  { %v1368_v47 = vmul.f32 %v2506_v45, %v1366_v46 }
0x19ee   :  { %1370 = vrot.lane.b32.xlu0 %v1368_v47, %s2737_s3 }
0x1a60   :  { %v1371_v50 = vpop.permute.xlu0 %1370 }
0x1a61   :  { %v1373_v51 = vadd.f32 %v1371_v50, %v1363_v49 }
0x1a63   :  { %2507 = vtanh.f32 %v1373_v51  ;;  %v1472_v6 = vrot.slane %v1373_v51, 6 }
0x1a70   :  { %v2508_v53 = vpop.eup %2507 }
0x1a71   :  { %1376 = vrot.lane.b32.xlu1 %v2508_v53, %s2736_s12 }
0x1ae3   :  { %v1377_v14 = vpop.permute.xlu1 %1376 }
0x1ae4   :  { %v3072_v54 = vmul.f32 %v2506_v45, %v1377_v14 }
0x1ae6   :  { %v1385_v55 = vrot.slane %v3072_v54, 2 }
0x1ae8   :  { %1386 = vrot.lane.b32.xlu0 %v1385_v55, %s2737_s3 }
0x1b5a   :  { %v1387_v57 = vpop.permute.xlu0 %1386 }
0x1b5b   :  { %2356 = vmatmul.mubr.msk.f32.vlgmr.msra.gmra.mxu0 %vm116_vm1, %v1387_v57 }
0x1b5c   :  { %2370 = vmatpush3.msra.mxu0 %v2999_v3  ;;  %2377 = vmatprep.mubr.msk.f32.mxu0 %vm2735_vm0, %v2734_v0 }
0x1b5d   :  { %2371 = vmatprep.subr.mxu0 %v2734_v0 }
0x1b5e   :  { %2372 = vmatpush3.msra.mxu0 %v3002_v62 }
0x1b5f   :  { %2373 = vmatprep.subr.mxu0 %v2734_v0 }
0x1b60   :  { %2374 = vmatpush3.msra.mxu0 %v3005_v4 }
0x1b61   :  { %2375 = vmatprep.subr.mxu0 %v2734_v0 }
0x1b62   :  { %2376 = vmatpush3.msra.mxu0 %v3011_v63 }
0x1b63   :  { %2391 = vmatprep.subr.mxu0 %v2734_v0 }
0x1c1b   :  { %v1456_v58 = vpop.f32.mrf.mxu0 }
0x1c1c   :  { %v1461_v52 = vrot.slane %v1456_v58, 4 }
0x1c1d   :  { %v2357_v36 = vpop.f32.mrf.mxu0 }
0x1c1e   :  { %v1463_v59 = vadd.f32 %v1461_v52, %v3049_v19 }
0x1c20   :  { %2509 = vtanh.f32 %v1463_v59  ;;  %v1464_v61 = vsub.f32 0.0, %v1463_v59 }
0x1c22   :  { %v1465_v15 = vmul.f32 1.442695, %v1464_v61 }
0x1c24   :  { %2511 = vpow2.f32 %v1465_v15 }
0x1c2d   :  { %v2510_v60 = vpop.eup %2509 }
0x1c2e   :  { %1476 = vrot.lane.b32.xlu1 %v2510_v60, %s2736_s12 }
0x1c31   :  { %v2512_v1 = vpop.eup %2511 }
0x1c32   :  { %v1467_v7 = vadd.f32 1.0, %v2512_v1 }
0x1c34   :  { %2513 = vrcp.f32 %v1467_v7 }
0x1c41   :  { %v2514_v2 = vpop.eup %2513 }
0x1c42   :  { %v1474_v8 = vmul.f32 %v2514_v2, %v1472_v6 }
0x1ca0   :  { %v1477_v5 = vpop.permute.xlu1 %1476 }
0x1ca1   :  { %v1479_v9 = vmul.f32 %v2514_v2, %v1477_v5 }
0x1ca3   :  { %1481 = vrot.lane.b32.xlu0 %v1479_v9, %s2737_s3 }
0x1d15   :  { %v1482_v10 = vpop.permute.xlu0 %1481 }
0x1d16   :  { %v1484_v11 = vadd.f32 %v1482_v10, %v1474_v8 }
0x1d18   :  { %2515 = vtanh.f32 %v1484_v11  ;;  %v1583_v34 = vrot.slane %v1484_v11, 6 }
0x1d25   :  { %v2516_v12 = vpop.eup %2515 }
0x1d26   :  { %1487 = vrot.lane.b32.xlu1 %v2516_v12, %s2736_s12 }
0x1d98   :  { %v1488_v13 = vpop.permute.xlu1 %1487 }
0x1d99   :  { %v3091_v18 = vmul.f32 %v2514_v2, %v1488_v13 }
0x1d9b   :  { %v1496_v20 = vrot.slane %v3091_v18, 4 }
0x1d9d   :  { %1497 = vrot.lane.b32.xlu0 %v1496_v20, %s2737_s3 }
0x1e0f   :  { %v1498_v21 = vpop.permute.xlu0 %1497 }
0x1e10   :  { %2367 = vmatmul.mubr.msk.f32.vlgmr.msra.gmra.mxu1 %vm116_vm1, %v1498_v21 }
0x1e11   :  { %2381 = vmatpush3.msra.mxu1 %v2999_v3  ;;  %2388 = vmatprep.mubr.msk.f32.mxu1 %vm2735_vm0, %v2734_v0 }
0x1e12   :  { %2382 = vmatprep.subr.mxu1 %v2734_v0 }
0x1e13   :  { %2383 = vmatpush3.msra.mxu1 %v3002_v62 }
0x1e14   :  { %2384 = vmatprep.subr.mxu1 %v2734_v0 }
0x1e15   :  { %2385 = vmatpush3.msra.mxu1 %v3005_v4 }
0x1e16   :  { %2386 = vmatprep.subr.mxu1 %v2734_v0 }
0x1e17   :  { %2387 = vmatpush3.msra.mxu1 %v3011_v63 }
0x1e18   :  { %2402 = vmatprep.subr.mxu1 %v2734_v0 }
0x1ed0   :  { %v1567_v22 = vpop.f32.mrf.mxu1 }
0x1ed1   :  { %v1572_v23 = vrot.slane %v1567_v22, 2 }
0x1ed2   :  { %v2368_v24 = vpop.f32.mrf.mxu1 }
0x1ed3   :  { %v1574_v25 = vadd.f32 %v1572_v23, %v3049_v19 }
0x1ed5   :  { %2517 = vtanh.f32 %v1574_v25  ;;  %v1575_v27 = vsub.f32 0.0, %v1574_v25 }
0x1ed7   :  { %v1576_v28 = vmul.f32 1.442695, %v1575_v27 }
0x1ed9   :  { %2519 = vpow2.f32 %v1576_v28 }
0x1ee2   :  { %v2518_v26 = vpop.eup %2517 }
0x1ee3   :  { %1587 = vrot.lane.b32.xlu1 %v2518_v26, %s2736_s12 }
0x1ee6   :  { %v2520_v29 = vpop.eup %2519 }
0x1ee7   :  { %v1578_v30 = vadd.f32 1.0, %v2520_v29 }
0x1ee9   :  { %2521 = vrcp.f32 %v1578_v30 }
0x1ef6   :  { %v2522_v31 = vpop.eup %2521 }
0x1ef7   :  { %v1585_v17 = vmul.f32 %v2522_v31, %v1583_v34 }
0x1f55   :  { %v1588_v32 = vpop.permute.xlu1 %1587 }
0x1f56   :  { %v1590_v33 = vmul.f32 %v2522_v31, %v1588_v32 }
0x1f58   :  { %1592 = vrot.lane.b32.xlu0 %v1590_v33, %s2737_s3 }
0x1fca   :  { %v1593_v35 = vpop.permute.xlu0 %1592 }
0x1fcb   :  { %v1595_v37 = vadd.f32 %v1593_v35, %v1585_v17 }
0x1fcd   :  { %2523 = vtanh.f32 %v1595_v37  ;;  %v1691_v14 = vrot.slane %v1595_v37, 6 }
0x1fda   :  { %v2524_v19 = vpop.eup %2523 }
0x1fdb   :  { %1598 = vrot.lane.b32.xlu1 %v2524_v19, %s2736_s12 }
0x204d   :  { %v1599_v38 = vpop.permute.xlu1 %1598 }
0x204e   :  { %v3110_v39 = vmul.f32 %v2522_v31, %v1599_v38 }
0x2050   :  { %v1607_v40 = vrot.slane %v3110_v39, 6 }
0x2052   :  { %1608 = vrot.lane.b32.xlu0 %v1607_v40, %s2737_s3 }
0x20c4   :  { %v1609_v41 = vpop.permute.xlu0 %1608 }
0x20c5   :  { %2378 = vmatmul.mubr.msk.f32.vlgmr.msra.gmra.mxu0 %vm116_vm1, %v1609_v41 }
0x20c6   :  { %2392 = vmatpush3.msra.mxu0 %v2999_v3  ;;  %2399 = vmatprep.mubr.msk.f32.mxu0 %vm2735_vm0, %v2734_v0 }
0x20c7   :  { %2393 = vmatprep.subr.mxu0 %v2734_v0 }
0x20c8   :  { %2394 = vmatpush3.msra.mxu0 %v3002_v62 }
0x20c9   :  { %2395 = vmatprep.subr.mxu0 %v2734_v0 }
0x20ca   :  { %2396 = vmatpush3.msra.mxu0 %v3005_v4 }
0x20cb   :  { %2397 = vmatprep.subr.mxu0 %v2734_v0 }
0x20cc   :  { %2398 = vmatpush3.msra.mxu0 %v3011_v63 }
0x2185   :  { %v1678_v42 = vpop.f32.mrf.mxu0 }
0x2186   :  { %v1682_v43 = vadd.f32 %v1678_v42, %v3047_v16 }
0x2187   :  { %v2379_v44 = vpop.f32.mrf.mxu0 }
0x2188   :  { %2525 = vtanh.f32 %v1682_v43  ;;  %v1683_v46 = vsub.f32 0.0, %v1682_v43 }
0x218a   :  { %v1684_v47 = vmul.f32 1.442695, %v1683_v46 }
0x218c   :  { %2527 = vpow2.f32 %v1684_v47 }
0x2195   :  { %v2526_v45 = vpop.eup %2525 }
0x2196   :  { %1695 = vrot.lane.b32.xlu1 %v2526_v45, %s2736_s12 }
0x2199   :  { %v2528_v48 = vpop.eup %2527 }
0x219a   :  { %v1686_v49 = vadd.f32 1.0, %v2528_v48 }
0x219c   :  { %2529 = vrcp.f32 %v1686_v49 }
0x21a9   :  { %v2530_v50 = vpop.eup %2529 }
0x21aa   :  { %v1693_v55 = vmul.f32 %v2530_v50, %v1691_v14 }
0x2208   :  { %v1696_v51 = vpop.permute.xlu1 %1695 }
0x2209   :  { %v1698_v53 = vmul.f32 %v2530_v50, %v1696_v51 }
0x220b   :  { %1700 = vrot.lane.b32.xlu0 %v1698_v53, %s2737_s3 }
0x227d   :  { %v1701_v57 = vpop.permute.xlu0 %1700 }
0x227e   :  { %v1703_v58 = vadd.f32 %v1701_v57, %v1693_v55 }
0x2280   :  { %2531 = vtanh.f32 %v1703_v58 }
0x228d   :  { %v2532_v52 = vpop.eup %2531 }
0x228e   :  { %1706 = vrot.lane.b32.xlu1 %v2532_v52, %s2736_s12 }
0x2300   :  { %v1707_v36 = vpop.permute.xlu1 %1706 }
0x2301   :  { %v1709_v59 = vmul.f32 %v2530_v50, %v1707_v36 }
0x2303   :  { %1711 = vrot.lane.b32.xlu0 %v1709_v59, %s2737_s3 }
0x2375   :  { %v1712_v60 = vpop.permute.xlu0 %1711 }
0x2376   :  { %1714 = vst.msk [vmem:[#allocation12 + $0x8] sm:$0x3] %vm300_vm2, %v1712_v60  ;;  %2389 = vmatmul.mubr.msk.f32.vlgmr.msra.gmra.mxu1 %vm116_vm1, %v1712_v60 }
0x2377   :  { %2403 = vmatpush3.msra.mxu1 %v2999_v3  ;;  %2410 = vmatprep.mubr.msk.f32.mxu1 %vm2735_vm0, %v2734_v0 }
0x2378   :  { %2404 = vmatprep.subr.mxu1 %v2734_v0 }
0x2379   :  { %2405 = vmatpush3.msra.mxu1 %v3002_v62 }
0x237a   :  { %2406 = vmatprep.subr.mxu1 %v2734_v0 }
0x237b   :  { %2407 = vmatpush3.msra.mxu1 %v3005_v4 }
0x237c   :  { %2408 = vmatprep.subr.mxu1 %v2734_v0 }
0x237d   :  { %2409 = vmatpush3.msra.mxu1 %v3011_v63  ;;  %v1799_v63 = vrot.slane %v1703_v58, 6 }
0x2436   :  { %v1783_v61 = vpop.f32.mrf.mxu1 }
0x2437   :  { %v1788_v15 = vrot.slane %v1783_v61, 6 }
0x2438   :  { %v2390_v1 = vpop.f32.mrf.mxu1 }
0x2439   :  { %v1790_v3 = vadd.f32 %v1788_v15, %v3047_v16 }
0x243b   :  { %2533 = vtanh.f32 %v1790_v3  ;;  %v1791_v2 = vsub.f32 0.0, %v1790_v3 }
0x243d   :  { %v1792_v5 = vmul.f32 1.442695, %v1791_v2 }
0x243f   :  { %2535 = vpow2.f32 %v1792_v5 }
0x2448   :  { %v2534_v7 = vpop.eup %2533 }
0x2449   :  { %1803 = vrot.lane.b32.xlu1 %v2534_v7, %s2736_s12 }
0x244c   :  { %v2536_v62 = vpop.eup %2535 }
0x244d   :  { %v1794_v9 = vadd.f32 1.0, %v2536_v62 }
0x244f   :  { %2537 = vrcp.f32 %v1794_v9 }
0x245c   :  { %v2538_v4 = vpop.eup %2537 }
0x245d   :  { %v1801_v8 = vmul.f32 %v2538_v4, %v1799_v63 }
0x24bb   :  { %v1804_v6 = vpop.permute.xlu1 %1803 }
0x24bc   :  { %v1806_v0 = vmul.f32 %v2538_v4, %v1804_v6 }
0x24be   :  { %1808 = vrot.lane.b32.xlu0 %v1806_v0, %s2737_s3 }
0x2530   :  { %v1809_v10 = vpop.permute.xlu0 %1808 }
0x2531   :  { %v1811_v11 = vadd.f32 %v1809_v10, %v1801_v8 }
0x2533   :  { %2539 = vtanh.f32 %v1811_v11  ;;  %v1910_v17 = vrot.slane %v1811_v11, 6 }
0x2540   :  { %v2540_v12 = vpop.eup %2539 }
0x2541   :  { %1814 = vrot.lane.b32.xlu1 %v2540_v12, %s2736_s12 }
0x25b3   :  { %v1815_v13 = vpop.permute.xlu1 %1814 }
0x25b4   :  { %v3144_v20 = vmul.f32 %v2538_v4, %v1815_v13 }
0x25b6   :  { %v1823_v21 = vrot.slane %v3144_v20, 2 }
0x25b8   :  { %1824 = vrot.lane.b32.xlu0 %v1823_v21, %s2737_s3 }
0x262a   :  { %v1825_v22 = vpop.permute.xlu0 %1824 }
0x262b   :  { %2400 = vmatmul.mubr.msk.f32.vlgmr.msra.gmra.mxu0 %vm116_vm1, %v1825_v22 }
0x26eb   :  { %v1894_v23 = vpop.f32.mrf.mxu0 }
0x26ec   :  { %v1899_v24 = vrot.slane %v1894_v23, 4 }
0x26ed   :  { %v2401_v25 = vpop.f32.mrf.mxu0 }
0x26ee   :  { %v1901_v26 = vadd.f32 %v1899_v24, %v3047_v16 }
0x26f0   :  { %2541 = vtanh.f32 %v1901_v26  ;;  %v1902_v28 = vsub.f32 0.0, %v1901_v26 }
0x26f2   :  { %v1903_v29 = vmul.f32 1.442695, %v1902_v28 }
0x26f4   :  { %2543 = vpow2.f32 %v1903_v29 }
0x26fd   :  { %v2542_v27 = vpop.eup %2541 }
0x26fe   :  { %1914 = vrot.lane.b32.xlu1 %v2542_v27, %s2736_s12 }
0x2701   :  { %v2544_v30 = vpop.eup %2543 }
0x2702   :  { %v1905_v31 = vadd.f32 1.0, %v2544_v30 }
0x2704   :  { %2545 = vrcp.f32 %v1905_v31 }
0x2711   :  { %v2546_v32 = vpop.eup %2545 }
0x2712   :  { %v1912_v35 = vmul.f32 %v2546_v32, %v1910_v17 }
0x2770   :  { %v1915_v33 = vpop.permute.xlu1 %1914 }
0x2771   :  { %v1917_v34 = vmul.f32 %v2546_v32, %v1915_v33 }
0x2773   :  { %1919 = vrot.lane.b32.xlu0 %v1917_v34, %s2737_s3 }
0x27e5   :  { %v1920_v37 = vpop.permute.xlu0 %1919 }
0x27e6   :  { %v1922_v19 = vadd.f32 %v1920_v37, %v1912_v35 }
0x27e8   :  { %2547 = vtanh.f32 %v1922_v19 }
0x27f5   :  { %v2548_v38 = vpop.eup %2547 }
0x27f6   :  { %1925 = vrot.lane.b32.xlu1 %v2548_v38, %s2736_s12 }
0x2868   :  { %v1926_v40 = vpop.permute.xlu1 %1925 }
0x2869   :  { %v1928_v41 = vmul.f32 %v2546_v32, %v1926_v40 }
0x286b   :  { %v1934_v42 = vrot.slane %v1928_v41, 4 }
0x286d   :  { %1935 = vrot.lane.b32.xlu0 %v1934_v42, %s2737_s3 }
0x28df   :  { %v1936_v43 = vpop.permute.xlu0 %1935 }
0x28e0   :  { %2411 = vmatmul.mubr.msk.f32.vlgmr.msra.gmra.mxu1 %vm116_vm1, %v1936_v43 }
0x29a0   :  { %v2005_v44 = vpop.f32.mrf.mxu1 }
0x29a1   :  { %v2010_v45 = vrot.slane %v2005_v44, 2 }
0x29a2   :  { %v2412_v46 = vpop.f32.mrf.mxu1 }
0x29a3   :  { %v2012_v47 = vadd.f32 %v2010_v45, %v3047_v16  ;;  %v2021_v16 = vrot.slane %v1922_v19, 6 }
0x29a5   :  { %2549 = vtanh.f32 %v2012_v47  ;;  %v2013_v49 = vsub.f32 0.0, %v2012_v47 }
0x29a7   :  { %v2014_v50 = vmul.f32 1.442695, %v2013_v49 }
0x29a9   :  { %2551 = vpow2.f32 %v2014_v50 }
0x29b2   :  { %v2550_v48 = vpop.eup %2549 }
0x29b3   :  { %2025 = vrot.lane.b32.xlu1 %v2550_v48, %s2736_s12 }
0x29b6   :  { %v2552_v51 = vpop.eup %2551 }
0x29b7   :  { %v2016_v53 = vadd.f32 1.0, %v2552_v51 }
0x29b9   :  { %2553 = vrcp.f32 %v2016_v53 }
0x29c6   :  { %v2554_v14 = vpop.eup %2553 }
0x29c7   :  { %v2023_v58 = vmul.f32 %v2554_v14, %v2021_v16 }
0x2a25   :  { %v2026_v55 = vpop.permute.xlu1 %2025 }
0x2a26   :  { %v2028_v57 = vmul.f32 %v2554_v14, %v2026_v55 }
0x2a28   :  { %2030 = vrot.lane.b32.xlu0 %v2028_v57, %s2737_s3 }
0x2a2c   :  { %1381 = vrot.lane.b32.xlu0 %v3072_v54, %s2737_s3 }
0x2a30   :  { %1603 = vrot.lane.b32.xlu0 %v3110_v39, %s2737_s3 }
0x2a9a   :  { %v2031_v52 = vpop.permute.xlu0 %2030 }
0x2a9b   :  { %v2033_v36 = vadd.f32 %v2031_v52, %v2023_v58 }
0x2a9d   :  { %2555 = vtanh.f32 %v2033_v36 }
0x2a9e   :  { %v1382_v59 = vpop.permute.xlu0 %1381 }
0x2a9f   :  { %1384 = vst.msk [vmem:[#allocation12] sm:$0xc] %vm409_vm3, %v1382_v59 }
0x2aa2   :  { %v1604_v60 = vpop.permute.xlu0 %1603 }
0x2aa3   :  { %1606 = vst.msk [vmem:[#allocation12] sm:$0xc0] %vm633_vm4, %v1604_v60 }
0x2aaa   :  { %v2556_v61 = vpop.eup %2555 }
0x2aab   :  { %2036 = vrot.lane.b32.xlu1 %v2556_v61, %s2736_s12 }
0x2aaf   :  { %1075 = vrot.lane.b32.xlu1 %v2988_v56, %s2738_s6 }
0x2ab3   :  { %1492 = vrot.lane.b32.xlu1 %v3091_v18, %s2737_s3 }
0x2ab7   :  { %1819 = vrot.lane.b32.xlu1 %v3144_v20, %s2737_s3 }
0x2abb   :  { %2048 = vrot.lane.b32.xlu1 %v2033_v36, %s2738_s6 }
0x2b1d   :  { %v2037_v54 = vpop.permute.xlu1 %2036 }
0x2b1e   :  { %v2039_v39 = vmul.f32 %v2554_v14, %v2037_v54 }
0x2b20   :  { %2041 = vrot.lane.b32.xlu0 %v2039_v39, %s2737_s3 }
0x2b21   :  { %v1076_v15 = vpop.permute.xlu1 %1075 }
0x2b22   :  { %1078 = vst.msk [vmem:[#allocation15 - $0x6] sm:$0xc0] %vm633_vm4, %v1076_v15 }
0x2b24   :  { %1930 = vrot.lane.b32.xlu0 %v1928_v41, %s2737_s3 }
0x2b25   :  { %v1493_v1 = vpop.permute.xlu1 %1492 }
0x2b26   :  { %1495 = vst.msk [vmem:[#allocation12] sm:$0x30] %vm521_vm5, %v1493_v1 }
0x2b29   :  { %v1820_v56 = vpop.permute.xlu1 %1819 }
0x2b2a   :  { %1822 = vst.msk [vmem:[#allocation12 + $0x8] sm:$0xc] %vm409_vm3, %v1820_v56 }
0x2b2d   :  { %v2049_v18 = vpop.permute.xlu1 %2048 }
0x2b2e   :  { %2052 = vst.msk [vmem:[#allocation15 - $0x4] sm:$0xc0] %vm633_vm4, %v2049_v18 }
0x2b92   :  { %v2042_v3 = vpop.permute.xlu0 %2041 }
0x2b93   :  { %2044 = vst.msk [vmem:[#allocation12 + $0x8] sm:$0xc0] %vm633_vm4, %v2042_v3  ;;  %2046 = vst.msk [vmem:[#allocation13 - $0x4] sm:$0xc0] %vm633_vm4, %v2042_v3 }
0x2b94   :  { %2668 = shalt.err (!%p2665_p1)
}
0x2b95   :  { %s2742_s24 = smov 2   ;;  %s2677_s26 = scalar_lea.vmem %s2083_s20, 64 }
0x2b96   :  { %2076 = dma.vmem_to_hbm [thread:$0]  %s2071_s18, 64, %s3210_s8, [#allocation14], %s2737_s3, %s2737_s3, %s2742_s24  }
0x2b97   :  { %p2678_p2 = scmp.ne.s32.totalorder %s2083_s20, %s2677_s26  ;;  %p2682_p3 = scmp.lt.s32.totalorder %s2083_s20, %s2083_s20 }
0x2b98   :  { %p2683_p4 = scmp.lt.s32.totalorder %s2677_s26, %s2677_s26 }
0x2b9a   :  { %p2684_p5 = por %p2683_p4, %p2682_p3 }
0x2b9c   :  { %p2685_p6 = pnand %p2684_p5, %p2678_p2 }
0x2b9e   :  { %2688 = shalt.err (!%p2685_p6)
}
0x2b9f   :  { %2088 = dma.vmem_to_hbm [thread:$0]  %s2083_s20, 64, %s3211_s9, [#allocation14], %s2737_s3, %s2737_s3, %s2742_s24   ;;  %v1931_v7 = vpop.permute.xlu0 %1930 }
0x2ba0   :  { %1933 = vst.msk [vmem:[#allocation12 + $0x8] sm:$0x30] %vm521_vm5, %v1931_v7  ;;  %s2697_s8 = scalar_lea.vmem %s3178_s22, 256  ;;  %p2702_p8 = scmp.lt.s32.totalorder %s3178_s22, %s3178_s22 }
0x2ba1   :  { %p2698_p7 = scmp.ne.s32.totalorder %s3178_s22, %s2697_s8  ;;  %p2703_p9 = scmp.lt.s32.totalorder %s2697_s8, %s2697_s8 }
0x2ba3   :  { %p2704_p10 = por %p2703_p9, %p2702_p8 }
0x2ba5   :  { %p2705_p11 = pnand %p2704_p10, %p2698_p7 }
0x2ba7   :  { %2708 = shalt.err (!%p2705_p11)
}
0x2ba8   :  { %2064 = dma.vmem_to_hbm [thread:$0]  %s3178_s22, 256, %s3209_s7, [#allocation5], %s2729_s14, %s2729_s14, %s2730_s15  }
0x2ba9   :  { %2723 = dma.done.wait [#allocation5], 256  }
0x2baa   :  { %2724 = vsyncadd [#allocation5], 4294967040 }
0x2bab   :  { %2725 = dma.done.wait [#allocation14], 128  }
0x2bac   :  { %2726 = vsyncadd [#allocation14], 4294967168 }
0x2bad   :  { %2098 = vsyncpa [#allocation4], 1 }
0x2bae   :  { %2099 = vsyncpa [#allocation7], 1 }
0x2baf   :  { %2100 = vsyncpa [#allocation10], 1 }
0x2bb0   :  { %2101 = vsyncpa [#allocation5], 1 }
0x2bb1   :  { %2102 = vsyncpa [#allocation14], 1 }

</bundles_post_ra>
